<compile_context>
chip_gen: v6e
topology: v6e:2x2x1
jax: 0.10.0
libtpu: 0.0.40
codegen_flags: <defaults>
</compile_context>

<pallas_src>
import functools
import math

import numpy as np
import jax
import jax.numpy as jnp
from jax.experimental import pallas as pl
from jax.experimental.pallas import tpu as pltpu

K = 3               # ConvTranspose2d kernel size
C_OUT = 13          # ConvTranspose2d(1, 13, 3)
C_PAD = 16          # channel dim padded to a sublane multiple
N_TAPS = K * K + 1  # 9 spatial taps + 1 ones-row carrying the folded conv bias
T_PAD = 16          # tap rows padded to a sublane multiple
PARAM_LANES = 128   # one lane-dense packed-params slab
GAMMA_COL = 16
BETA_COL = 17
BN_EPS = 1e-5


def _erf(x):
    # float32-accurate erf (Numerical Recipes erfc rational approx, |err| < 1.2e-7).
    # TODO(synk): lax.erf has no guaranteed Mosaic lowering, so erf is evaluated
    # in-kernel with an exp-based approximation (exp + rcp run on the EUP).
    a = jnp.abs(x)
    d = 1.0 + 0.5 * a
    t0 = pl.reciprocal(d, approx=True)        # EUP rcp (free slot)
    t = t0 * (2.0 - d * t0)                   # one Newton step -> full f32 accuracy
    poly = -1.26551223 + t * (1.00002368 + t * (0.37409196 + t * (0.09678418 +
           t * (-0.18628806 + t * (0.27886807 + t * (-1.13520398 + t * (1.48851587 +
           t * (-0.82215223 + t * 0.17087277))))))))
    erf_abs = 1.0 - t * jnp.exp(-a * a + poly)
    return jnp.where(x >= 0.0, erf_abs, -erf_abs)


def _fused_kernel(p_ref, params_ref, out_ref, *, cnt):
    # p_ref:      (T_PAD, SP_PAD)       im2col rows of the zero-padded input
    #                                    (rows 0..8 = taps, row 9 = ones/bias row,
    #                                     padded rows & padded lanes are zero)
    # params_ref: (C_PAD, PARAM_LANES)  cols 0..8 flipped taps, col 9 conv bias,
    #                                    col 16 gamma, col 17 beta
    # out_ref:    (C_PAD, SP_PAD)       lane-dense fused output slab
    params = params_ref[...]
    patches = p_ref[...]

    # --- ConvTranspose2d (+ bias folded via the ones row) as N_TAPS exact-f32
    #     VPU broadcast-FMAs; the K*K=9 contraction is far too small for the MXU.
    acc = params[:, 0:1] * patches[0:1, :]
    for t in range(1, N_TAPS):
        acc = acc + params[:, t:t + 1] * patches[t:t + 1, :]
    v1 = jnp.maximum(acc, 0.0)                              # clamp(min=0)

    # --- BatchNorm2d, training mode: biased batch stats over (N, H, W) per
    #     channel; two lane reductions, one-pass variance.  Padded lanes /
    #     channels contribute exactly 0 to both sums; cnt is the TRUE N*Ho*Wo.
    inv_cnt = 1.0 / cnt
    s = jnp.sum(v1, axis=-1, keepdims=True)                 # (C_PAD, 1)
    sq = jnp.sum(v1 * v1, axis=-1, keepdims=True)           # (C_PAD, 1)
    mean = s * inv_cnt
    var = jnp.maximum(sq * inv_cnt - mean * mean, 0.0)
    scale = jax.lax.rsqrt(var + BN_EPS) * params[:, GAMMA_COL:GAMMA_COL + 1]
    shift = params[:, BETA_COL:BETA_COL + 1] - mean * scale
    v2 = v1 * scale + shift                                 # single slab-wide FMA

    # --- v6 = v2 * (erf(v2 / sqrt(2)) + 1)
    v4 = _erf(v2 * 0.7071067811865476)
    out_ref[...] = v2 * (v4 + 1.0)                          # unmasked full-width store


@jax.jit
def model_forward(x, w, b, gamma, beta):
    """x: (N, 1, H, W) f32; w: (1, C, K, K) (PyTorch ConvTranspose2d layout);
    b/gamma/beta: (C,).  Returns (N, C, H+K-1, W+K-1) f32."""
    n, cin, h, wdim = x.shape
    assert cin == 1
    ho, wo = h + K - 1, wdim + K - 1
    sp = n * ho * wo
    sp_pad = ((sp + 127) // 128) * 128       # lane-dense slab: unmasked vld/vst

    # ConvTranspose2d(stride=1, pad=0) == VALID correlation of the (K-1)-zero-
    # padded input with the spatially flipped kernel.  Stage im2col rows plus a
    # ones row (valid columns only) that carries the folded conv bias.
    xpad = jnp.pad(x[:, 0, :, :], ((0, 0), (K - 1, K - 1), (K - 1, K - 1)))
    rows = [xpad[:, ki:ki + ho, kj:kj + wo].reshape(sp)
            for ki in range(K) for kj in range(K)]
    rows.append(jnp.ones((sp,), jnp.float32))                    # bias / ones row
    patches = jnp.stack(rows, axis=0)                            # (10, sp)
    patches = jnp.pad(patches, ((0, T_PAD - N_TAPS), (0, sp_pad - sp)))

    # Pack ALL small per-channel operands into ONE lane-dense (C_PAD, 128) slab.
    wf = jnp.flip(w[0], axis=(1, 2)).reshape(C_OUT, K * K)       # flipped taps
    params = jnp.zeros((C_PAD, PARAM_LANES), jnp.float32)
    params = params.at[:C_OUT, 0:K * K].set(wf)
    params = params.at[:C_OUT, K * K].set(b)                     # conv bias (tap 9)
    params = params.at[:C_OUT, GAMMA_COL].set(gamma)
    params = params.at[:C_OUT, BETA_COL].set(beta)

    # NOTE: a single grid step is enough at these toy shapes.  If N/H/W grow,
    # tile SP with a grid axis and split BatchNorm into a stats pass (partial
    # sums) + a normalize/erf pass marked "parallel" (v7x: 2 TCs, 64 MiB VMEM),
    # keeping per-block lane width a large multiple of 128.
    out = pl.pallas_call(
        functools.partial(_fused_kernel, cnt=float(sp)),
        out_shape=jax.ShapeDtypeStruct((C_PAD, sp_pad), jnp.float32),
        grid=(1,),
        in_specs=[
            pl.BlockSpec((T_PAD, sp_pad), lambda i: (0, 0)),       # im2col rows
            pl.BlockSpec((C_PAD, PARAM_LANES), lambda i: (0, 0)),  # packed params
        ],
        out_specs=pl.BlockSpec((C_PAD, sp_pad), lambda i: (0, 0)),
        compiler_params=pltpu.CompilerParams(dimension_semantics=("arbitrary",)),
    )(patches, params)

    # (C_PAD, SP_PAD) -> (N, C, Ho, Wo); slice off padded channels/lanes (tiny).
    return out[:C_OUT, :sp].reshape(C_OUT, n, ho, wo).transpose(1, 0, 2, 3)


def reference_forward(x, w, b, gamma, beta):
    """Independent NumPy (float64) reference using the scatter-add definition of
    ConvTranspose2d."""
    x = x.astype(np.float64); w = w.astype(np.float64)
    b = b.astype(np.float64); gamma = gamma.astype(np.float64)
    beta = beta.astype(np.float64)
    n, _, h, wdim = x.shape
    c = w.shape[1]
    ho, wo = h + K - 1, wdim + K - 1
    v1 = np.zeros((n, c, ho, wo), np.float64)
    for ki in range(K):
        for kj in range(K):
            v1[:, :, ki:ki + h, kj:kj + wdim] += (
                x[:, 0:1] * w[0, :, ki, kj][None, :, None, None])
    v1 += b[None, :, None, None]
    v1 = np.maximum(v1, 0.0)                                     # clamp(min=0)
    mean = v1.mean(axis=(0, 2, 3), keepdims=True)
    var = v1.var(axis=(0, 2, 3), keepdims=True)                  # biased, like torch BN
    v2 = ((v1 - mean) / np.sqrt(var + BN_EPS)
          * gamma[None, :, None, None] + beta[None, :, None, None])
    erf_v = np.vectorize(math.erf)
    v4 = erf_v(v2 * 0.7071067811865476)
    return v2 * (v4 + 1.0)


if __name__ == "__main__":
    key = jax.random.PRNGKey(0)
    kx, kw, kb, kg, kbe = jax.random.split(key, 5)

    # Small shapes consistent with the module: (N, 1, H, W) single-channel input.
    N, H, W = 2, 16, 16
    x = jax.random.normal(kx, (N, 1, H, W), jnp.float32)
    w = 0.3 * jax.random.normal(kw, (1, C_OUT, K, K), jnp.float32)   # (in, out, kH, kW)
    b = 0.1 * jax.random.normal(kb, (C_OUT,), jnp.float32)
    gamma = 1.0 + 0.1 * jax.random.normal(kg, (C_OUT,), jnp.float32)
    beta = 0.05 * jax.random.normal(kbe, (C_OUT,), jnp.float32)

    out = model_forward(x, w, b, gamma, beta)
    out = jax.block_until_ready(out)

    ref = reference_forward(np.asarray(x), np.asarray(w), np.asarray(b),
                            np.asarray(gamma), np.asarray(beta))
    np.testing.assert_allclose(np.asarray(out), ref, rtol=1e-3, atol=1e-3)
    print("KERNEL_OK")
</pallas_src>

<mosaic_0001>
module attributes {stable_mosaic.version = 11 : i64} {
  func.func @_fused_kernel(%arg0: i32, %arg1: memref<16x768xf32, #tpu.memory_space<vmem>>, %arg2: memref<16x128xf32, #tpu.memory_space<vmem>>, %arg3: memref<16x768xf32, #tpu.memory_space<vmem>>) attributes {dimension_semantics = [#tpu.dimension_semantics<arbitrary>], iteration_bounds = array<i64: 1>, scalar_prefetch = 0 : i64, scratch_operands = 0 : i64, tpu.core_type = #tpu.core_type<tc>, window_params = [{pipeline_mode = #tpu.pipeline_mode<synchronous>, transform_indices = @transform_0, window_bounds = array<i64: 16, 768>}, {pipeline_mode = #tpu.pipeline_mode<synchronous>, transform_indices = @transform_1, window_bounds = array<i64: 16, 128>}, {pipeline_mode = #tpu.pipeline_mode<synchronous>, transform_indices = @transform_2, window_bounds = array<i64: 16, 768>}]} {
    %c0 = arith.constant 0 : index
    %c0_0 = arith.constant 0 : index
    %0 = vector.load %arg2[%c0, %c0_0] : memref<16x128xf32, #tpu.memory_space<vmem>>, vector<16x128xf32>
    %c0_1 = arith.constant 0 : index
    %c0_2 = arith.constant 0 : index
    %1 = vector.load %arg1[%c0_1, %c0_2] : memref<16x768xf32, #tpu.memory_space<vmem>>, vector<16x768xf32>
    %2 = vector.extract_strided_slice %0 {offsets = [0, 0], sizes = [16, 1], strides = [1, 1]} : vector<16x128xf32> to vector<16x1xf32>
    %3 = vector.extract_strided_slice %1 {offsets = [0, 0], sizes = [1, 768], strides = [1, 1]} : vector<16x768xf32> to vector<1x768xf32>
    %4 = vector.broadcast %2 : vector<16x1xf32> to vector<16x768xf32>
    %5 = vector.broadcast %3 : vector<1x768xf32> to vector<16x768xf32>
    %6 = arith.mulf %4, %5 : vector<16x768xf32>
    %7 = vector.extract_strided_slice %0 {offsets = [0, 1], sizes = [16, 1], strides = [1, 1]} : vector<16x128xf32> to vector<16x1xf32>
    %8 = vector.extract_strided_slice %1 {offsets = [1, 0], sizes = [1, 768], strides = [1, 1]} : vector<16x768xf32> to vector<1x768xf32>
    %9 = vector.broadcast %7 : vector<16x1xf32> to vector<16x768xf32>
    %10 = vector.broadcast %8 : vector<1x768xf32> to vector<16x768xf32>
    %11 = arith.mulf %9, %10 : vector<16x768xf32>
    %12 = arith.addf %6, %11 : vector<16x768xf32>
    %13 = vector.extract_strided_slice %0 {offsets = [0, 2], sizes = [16, 1], strides = [1, 1]} : vector<16x128xf32> to vector<16x1xf32>
    %14 = vector.extract_strided_slice %1 {offsets = [2, 0], sizes = [1, 768], strides = [1, 1]} : vector<16x768xf32> to vector<1x768xf32>
    %15 = vector.broadcast %13 : vector<16x1xf32> to vector<16x768xf32>
    %16 = vector.broadcast %14 : vector<1x768xf32> to vector<16x768xf32>
    %17 = arith.mulf %15, %16 : vector<16x768xf32>
    %18 = arith.addf %12, %17 : vector<16x768xf32>
    %19 = vector.extract_strided_slice %0 {offsets = [0, 3], sizes = [16, 1], strides = [1, 1]} : vector<16x128xf32> to vector<16x1xf32>
    %20 = vector.extract_strided_slice %1 {offsets = [3, 0], sizes = [1, 768], strides = [1, 1]} : vector<16x768xf32> to vector<1x768xf32>
    %21 = vector.broadcast %19 : vector<16x1xf32> to vector<16x768xf32>
    %22 = vector.broadcast %20 : vector<1x768xf32> to vector<16x768xf32>
    %23 = arith.mulf %21, %22 : vector<16x768xf32>
    %24 = arith.addf %18, %23 : vector<16x768xf32>
    %25 = vector.extract_strided_slice %0 {offsets = [0, 4], sizes = [16, 1], strides = [1, 1]} : vector<16x128xf32> to vector<16x1xf32>
    %26 = vector.extract_strided_slice %1 {offsets = [4, 0], sizes = [1, 768], strides = [1, 1]} : vector<16x768xf32> to vector<1x768xf32>
    %27 = vector.broadcast %25 : vector<16x1xf32> to vector<16x768xf32>
    %28 = vector.broadcast %26 : vector<1x768xf32> to vector<16x768xf32>
    %29 = arith.mulf %27, %28 : vector<16x768xf32>
    %30 = arith.addf %24, %29 : vector<16x768xf32>
    %31 = vector.extract_strided_slice %0 {offsets = [0, 5], sizes = [16, 1], strides = [1, 1]} : vector<16x128xf32> to vector<16x1xf32>
    %32 = vector.extract_strided_slice %1 {offsets = [5, 0], sizes = [1, 768], strides = [1, 1]} : vector<16x768xf32> to vector<1x768xf32>
    %33 = vector.broadcast %31 : vector<16x1xf32> to vector<16x768xf32>
    %34 = vector.broadcast %32 : vector<1x768xf32> to vector<16x768xf32>
    %35 = arith.mulf %33, %34 : vector<16x768xf32>
    %36 = arith.addf %30, %35 : vector<16x768xf32>
    %37 = vector.extract_strided_slice %0 {offsets = [0, 6], sizes = [16, 1], strides = [1, 1]} : vector<16x128xf32> to vector<16x1xf32>
    %38 = vector.extract_strided_slice %1 {offsets = [6, 0], sizes = [1, 768], strides = [1, 1]} : vector<16x768xf32> to vector<1x768xf32>
    %39 = vector.broadcast %37 : vector<16x1xf32> to vector<16x768xf32>
    %40 = vector.broadcast %38 : vector<1x768xf32> to vector<16x768xf32>
    %41 = arith.mulf %39, %40 : vector<16x768xf32>
    %42 = arith.addf %36, %41 : vector<16x768xf32>
    %43 = vector.extract_strided_slice %0 {offsets = [0, 7], sizes = [16, 1], strides = [1, 1]} : vector<16x128xf32> to vector<16x1xf32>
    %44 = vector.extract_strided_slice %1 {offsets = [7, 0], sizes = [1, 768], strides = [1, 1]} : vector<16x768xf32> to vector<1x768xf32>
    %45 = vector.broadcast %43 : vector<16x1xf32> to vector<16x768xf32>
    %46 = vector.broadcast %44 : vector<1x768xf32> to vector<16x768xf32>
    %47 = arith.mulf %45, %46 : vector<16x768xf32>
    %48 = arith.addf %42, %47 : vector<16x768xf32>
    %49 = vector.extract_strided_slice %0 {offsets = [0, 8], sizes = [16, 1], strides = [1, 1]} : vector<16x128xf32> to vector<16x1xf32>
    %50 = vector.extract_strided_slice %1 {offsets = [8, 0], sizes = [1, 768], strides = [1, 1]} : vector<16x768xf32> to vector<1x768xf32>
    %51 = vector.broadcast %49 : vector<16x1xf32> to vector<16x768xf32>
    %52 = vector.broadcast %50 : vector<1x768xf32> to vector<16x768xf32>
    %53 = arith.mulf %51, %52 : vector<16x768xf32>
    %54 = arith.addf %48, %53 : vector<16x768xf32>
    %55 = vector.extract_strided_slice %0 {offsets = [0, 9], sizes = [16, 1], strides = [1, 1]} : vector<16x128xf32> to vector<16x1xf32>
    %56 = vector.extract_strided_slice %1 {offsets = [9, 0], sizes = [1, 768], strides = [1, 1]} : vector<16x768xf32> to vector<1x768xf32>
    %57 = vector.broadcast %55 : vector<16x1xf32> to vector<16x768xf32>
    %58 = vector.broadcast %56 : vector<1x768xf32> to vector<16x768xf32>
    %59 = arith.mulf %57, %58 : vector<16x768xf32>
    %60 = arith.addf %54, %59 : vector<16x768xf32>
    %cst = arith.constant 0.000000e+00 : f32
    %61 = vector.broadcast %cst : f32 to vector<16x768xf32>
    %62 = arith.maximumf %60, %61 : vector<16x768xf32>
    %cst_3 = arith.constant dense<0.000000e+00> : vector<16xf32>
    %63 = vector.multi_reduction <add>, %62, %cst_3 [1] : vector<16x768xf32> to vector<16xf32>
    %64 = vector.shape_cast %63 : vector<16xf32> to vector<16x1xf32>
    %65 = arith.mulf %62, %62 : vector<16x768xf32>
    %cst_4 = arith.constant dense<0.000000e+00> : vector<16xf32>
    %66 = vector.multi_reduction <add>, %65, %cst_4 [1] : vector<16x768xf32> to vector<16xf32>
    %67 = vector.shape_cast %66 : vector<16xf32> to vector<16x1xf32>
    %cst_5 = arith.constant 0.00154320989 : f32
    %68 = vector.broadcast %cst_5 : f32 to vector<16x1xf32>
    %69 = arith.mulf %64, %68 : vector<16x1xf32>
    %cst_6 = arith.constant 0.00154320989 : f32
    %70 = vector.broadcast %cst_6 : f32 to vector<16x1xf32>
    %71 = arith.mulf %67, %70 : vector<16x1xf32>
    %72 = arith.mulf %69, %69 : vector<16x1xf32>
    %73 = arith.subf %71, %72 : vector<16x1xf32>
    %cst_7 = arith.constant 0.000000e+00 : f32
    %74 = vector.broadcast %cst_7 : f32 to vector<16x1xf32>
    %75 = arith.maximumf %73, %74 : vector<16x1xf32>
    %cst_8 = arith.constant 9.99999974E-6 : f32
    %76 = vector.broadcast %cst_8 : f32 to vector<16x1xf32>
    %77 = arith.addf %75, %76 : vector<16x1xf32>
    %78 = math.rsqrt %77 : vector<16x1xf32>
    %79 = vector.extract_strided_slice %0 {offsets = [0, 16], sizes = [16, 1], strides = [1, 1]} : vector<16x128xf32> to vector<16x1xf32>
    %80 = arith.mulf %78, %79 : vector<16x1xf32>
    %81 = vector.extract_strided_slice %0 {offsets = [0, 17], sizes = [16, 1], strides = [1, 1]} : vector<16x128xf32> to vector<16x1xf32>
    %82 = arith.mulf %69, %80 : vector<16x1xf32>
    %83 = arith.subf %81, %82 : vector<16x1xf32>
    %84 = vector.broadcast %80 : vector<16x1xf32> to vector<16x768xf32>
    %85 = arith.mulf %62, %84 : vector<16x768xf32>
    %86 = vector.broadcast %83 : vector<16x1xf32> to vector<16x768xf32>
    %87 = arith.addf %85, %86 : vector<16x768xf32>
    %cst_9 = arith.constant 0.707106769 : f32
    %88 = vector.broadcast %cst_9 : f32 to vector<16x768xf32>
    %89 = arith.mulf %87, %88 : vector<16x768xf32>
    %90 = math.absf %89 : vector<16x768xf32>
    %cst_10 = arith.constant 5.000000e-01 : f32
    %91 = vector.broadcast %cst_10 : f32 to vector<16x768xf32>
    %92 = arith.mulf %91, %90 : vector<16x768xf32>
    %cst_11 = arith.constant 1.000000e+00 : f32
    %93 = vector.broadcast %cst_11 : f32 to vector<16x768xf32>
    %94 = arith.addf %93, %92 : vector<16x768xf32>
    %95 = tpu.reciprocal %94 {approx = true} : vector<16x768xf32> -> vector<16x768xf32>
    %96 = arith.mulf %94, %95 : vector<16x768xf32>
    %cst_12 = arith.constant 2.000000e+00 : f32
    %97 = vector.broadcast %cst_12 : f32 to vector<16x768xf32>
    %98 = arith.subf %97, %96 : vector<16x768xf32>
    %99 = arith.mulf %95, %98 : vector<16x768xf32>
    %cst_13 = arith.constant 0.170872763 : f32
    %100 = vector.broadcast %cst_13 : f32 to vector<16x768xf32>
    %101 = arith.mulf %99, %100 : vector<16x768xf32>
    %cst_14 = arith.constant -0.822152256 : f32
    %102 = vector.broadcast %cst_14 : f32 to vector<16x768xf32>
    %103 = arith.addf %102, %101 : vector<16x768xf32>
    %104 = arith.mulf %99, %103 : vector<16x768xf32>
    %cst_15 = arith.constant 1.48851585 : f32
    %105 = vector.broadcast %cst_15 : f32 to vector<16x768xf32>
    %106 = arith.addf %105, %104 : vector<16x768xf32>
    %107 = arith.mulf %99, %106 : vector<16x768xf32>
    %cst_16 = arith.constant -1.13520396 : f32
    %108 = vector.broadcast %cst_16 : f32 to vector<16x768xf32>
    %109 = arith.addf %108, %107 : vector<16x768xf32>
    %110 = arith.mulf %99, %109 : vector<16x768xf32>
    %cst_17 = arith.constant 0.278868079 : f32
    %111 = vector.broadcast %cst_17 : f32 to vector<16x768xf32>
    %112 = arith.addf %111, %110 : vector<16x768xf32>
    %113 = arith.mulf %99, %112 : vector<16x768xf32>
    %cst_18 = arith.constant -0.186288059 : f32
    %114 = vector.broadcast %cst_18 : f32 to vector<16x768xf32>
    %115 = arith.addf %114, %113 : vector<16x768xf32>
    %116 = arith.mulf %99, %115 : vector<16x768xf32>
    %cst_19 = arith.constant 0.0967841818 : f32
    %117 = vector.broadcast %cst_19 : f32 to vector<16x768xf32>
    %118 = arith.addf %117, %116 : vector<16x768xf32>
    %119 = arith.mulf %99, %118 : vector<16x768xf32>
    %cst_20 = arith.constant 0.374091953 : f32
    %120 = vector.broadcast %cst_20 : f32 to vector<16x768xf32>
    %121 = arith.addf %120, %119 : vector<16x768xf32>
    %122 = arith.mulf %99, %121 : vector<16x768xf32>
    %cst_21 = arith.constant 1.00002372 : f32
    %123 = vector.broadcast %cst_21 : f32 to vector<16x768xf32>
    %124 = arith.addf %123, %122 : vector<16x768xf32>
    %125 = arith.mulf %99, %124 : vector<16x768xf32>
    %cst_22 = arith.constant -1.26551223 : f32
    %126 = vector.broadcast %cst_22 : f32 to vector<16x768xf32>
    %127 = arith.addf %126, %125 : vector<16x768xf32>
    %cst_23 = arith.constant 0.000000e+00 : f32
    %128 = vector.broadcast %cst_23 : f32 to vector<16x768xf32>
    %129 = arith.subf %128, %90 : vector<16x768xf32>
    %130 = arith.mulf %129, %90 : vector<16x768xf32>
    %131 = arith.addf %130, %127 : vector<16x768xf32>
    %132 = math.exp %131 : vector<16x768xf32>
    %133 = arith.mulf %99, %132 : vector<16x768xf32>
    %cst_24 = arith.constant 1.000000e+00 : f32
    %134 = vector.broadcast %cst_24 : f32 to vector<16x768xf32>
    %135 = arith.subf %134, %133 : vector<16x768xf32>
    %cst_25 = arith.constant 0.000000e+00 : f32
    %136 = vector.broadcast %cst_25 : f32 to vector<16x768xf32>
    %137 = arith.cmpf oge, %89, %136 : vector<16x768xf32>
    %cst_26 = arith.constant 0.000000e+00 : f32
    %138 = vector.broadcast %cst_26 : f32 to vector<16x768xf32>
    %139 = arith.subf %138, %135 : vector<16x768xf32>
    %140 = arith.select %137, %135, %139 : vector<16x768xi1>, vector<16x768xf32>
    %cst_27 = arith.constant 1.000000e+00 : f32
    %141 = vector.broadcast %cst_27 : f32 to vector<16x768xf32>
    %142 = arith.addf %140, %141 : vector<16x768xf32>
    %143 = arith.mulf %87, %142 : vector<16x768xf32>
    %c0_28 = arith.constant 0 : index
    %c0_29 = arith.constant 0 : index
    %144 = vector.load %arg3[%c0_28, %c0_29] : memref<16x768xf32, #tpu.memory_space<vmem>>, vector<16x768xf32>
    tpu.vector_store %arg3[%c0_28, %c0_29], %143 {strides = array<i32>} : memref<16x768xf32, #tpu.memory_space<vmem>>, vector<16x768xf32>,
    return
  }
  func.func @transform_0(%arg0: i32) -> (i32, i32) {
    %c0_i32 = arith.constant 0 : i32
    %c0_i32_0 = arith.constant 0 : i32
    %c0_i32_1 = arith.constant 0 : i32
    return %c0_i32, %c0_i32_0 : i32, i32
  }
  func.func @transform_1(%arg0: i32) -> (i32, i32) {
    %c0_i32 = arith.constant 0 : i32
    %c0_i32_0 = arith.constant 0 : i32
    %c0_i32_1 = arith.constant 0 : i32
    return %c0_i32, %c0_i32_0 : i32, i32
  }
  func.func @transform_2(%arg0: i32) -> (i32, i32) {
    %c0_i32 = arith.constant 0 : i32
    %c0_i32_0 = arith.constant 0 : i32
    %c0_i32_1 = arith.constant 0 : i32
    return %c0_i32, %c0_i32_0 : i32, i32
  }
}

</mosaic_0001>

<bundles_post_ra>
// kernel: model_forward.1
= control target key start
LH: loop header
LB: loop body
LE: loop exit
PB: predicated region body
PF: predicated region fallthrough
CT: control target
= control target key end

     0   :  { %v1255_v0 = vmov 1   ;;  %v1256_v1 = vmov 0   ;;  %v1257_v4 = vmov 2   ;;  %v1258_v5 = vmov 3   ;;  %s2120_s1 = inlined_call_operand.vmem [shape: f32[16,128], index: 1, kind: input, shape index: {}]   ;;  %s2121_s0 = inlined_call_operand.vmem [shape: f32[16,768], index: 0, kind: input, shape index: {}]   ;;  %s2122_s2 = inlined_call_operand.vmem [shape: f32[16,768], index: 2, kind: output, shape index: {}]  }
   0x1   :  { %1185 = vset.pattern.permute.xlu1 %v1255_v0  ;;  %1184 = vset.pattern.permute.xlu0 %v1256_v1  ;;  %v1286_v2 = vld [vmem:[%s2120_s1] sm:$0xff]  ;;  %v1293_v3 = vld [vmem:[%s2120_s1 + $0x8] sm:$0xff]  ;;  %v1259_v6 = vmov 4   ;;  %v1260_v7 = vmov 5   ;;  %v1261_v8 = vmov 6   ;;  %v1262_v9 = vmov 8  }
   0x2   :  { %2160 = vst [vmem:[#allocation2_spill] sm:$0xff] %v1286_v2  ;;  %72 = vperm.xlu1 %1185, %v1286_v2   ;;  %27 = vperm.xlu0 %1184, %v1286_v2   ;;  %2161 = vst [vmem:[#allocation3_spill] sm:$0xff] %v1293_v3  ;;  %v1263_v10 = vmov 9   ;;  %v1264_v11 = vmov 7   ;;  %v35_v12 = vlaneseq  ;;  %v13_v15 = vld [vmem:[%s2121_s0] sm:$0xff]  ;;  %v14_v16 = vld [vmem:[%s2121_s0 + $0x8] sm:$0xff] }
   0x3   :  { %v15_v17 = vld [vmem:[%s2121_s0 + $0x10] sm:$0xff]  ;;  %v16_v18 = vld [vmem:[%s2121_s0 + $0x18] sm:$0xff]  ;;  %v17_v19 = vld [vmem:[%s2121_s0 + $0x20] sm:$0xff] }
   0x4   :  { %v36_v13 = vshrl.u32 %v35_v12, 7  ;;  %v18_v20 = vld [vmem:[%s2121_s0 + $0x28] sm:$0xff]  ;;  %v23_v12 = vld [vmem:[%s2121_s0 + $0x50] sm:$0xff] }
   0x6   :  { %76 = vperm.xlu1 %1185, %v1293_v3   ;;  %32 = vperm.xlu0 %1184, %v1293_v3   ;;  %v1313_v14 = vsub.s32 1, %v36_v13  ;;  %v1333_v21 = vsub.s32 0, %v36_v13  ;;  %v137_v22 = vsub.s32 2, %v36_v13  ;;  %v193_v29 = vsub.s32 3, %v36_v13 }
   0x7   :  { %v249_v37 = vsub.s32 4, %v36_v13  ;;  %v305_v45 = vsub.s32 5, %v36_v13  ;;  %v361_v49 = vsub.s32 6, %v36_v13  ;;  %v417_v57 = vsub.s32 7, %v36_v13 }
   0x8   :  { %v1336_v23 = vrot.slane %v13_v15, %v1313_v14  ;;  %v1339_v24 = vrot.slane %v14_v16, %v1313_v14  ;;  %v1342_v25 = vrot.slane %v15_v17, %v1313_v14  ;;  %v1345_v26 = vrot.slane %v16_v18, %v1313_v14 }
   0x9   :  { %v1348_v27 = vrot.slane %v17_v19, %v1313_v14  ;;  %v1351_v28 = vrot.slane %v18_v20, %v1313_v14  ;;  %v1354_v30 = vrot.slane %v13_v15, %v1333_v21  ;;  %v1357_v31 = vrot.slane %v14_v16, %v1333_v21 }
   0xa   :  { %1187 = vset.pattern.permute.xlu1 %v1257_v4  ;;  %1186 = vset.pattern.permute.xlu0 %v1257_v4  ;;  %v1360_v32 = vrot.slane %v15_v17, %v1333_v21  ;;  %v1363_v33 = vrot.slane %v16_v18, %v1333_v21  ;;  %v1366_v34 = vrot.slane %v17_v19, %v1333_v21  ;;  %v19_v4 = vld [vmem:[%s2121_s0 + $0x30] sm:$0xff] }
   0xb   :  { %132 = vperm.xlu1 %1187, %v1293_v3   ;;  %128 = vperm.xlu0 %1186, %v1286_v2   ;;  %v1369_v35 = vrot.slane %v18_v20, %v1333_v21  ;;  %v1371_v36 = vrot.slane %v13_v15, %v137_v22  ;;  %v1373_v38 = vrot.slane %v14_v16, %v137_v22 }
   0xc   :  { %v1375_v39 = vrot.slane %v15_v17, %v137_v22  ;;  %v1377_v40 = vrot.slane %v16_v18, %v137_v22  ;;  %v1379_v41 = vrot.slane %v17_v19, %v137_v22  ;;  %v1381_v42 = vrot.slane %v18_v20, %v137_v22 }
   0xd   :  { %v1383_v43 = vrot.slane %v13_v15, %v193_v29  ;;  %v1385_v44 = vrot.slane %v14_v16, %v193_v29  ;;  %v1387_v46 = vrot.slane %v15_v17, %v193_v29  ;;  %v1389_v47 = vrot.slane %v16_v18, %v193_v29 }
   0xe   :  { %v1391_v48 = vrot.slane %v17_v19, %v193_v29  ;;  %v1393_v50 = vrot.slane %v18_v20, %v193_v29  ;;  %v1395_v51 = vrot.slane %v13_v15, %v249_v37  ;;  %v1397_v52 = vrot.slane %v14_v16, %v249_v37 }
   0xf   :  { %1188 = vset.pattern.permute.xlu1 %v1258_v5  ;;  %1189 = vset.pattern.permute.xlu0 %v1258_v5  ;;  %v1399_v53 = vrot.slane %v15_v17, %v249_v37  ;;  %v1401_v54 = vrot.slane %v16_v18, %v249_v37  ;;  %v1403_v55 = vrot.slane %v17_v19, %v249_v37  ;;  %v20_v5 = vld [vmem:[%s2121_s0 + $0x38] sm:$0xff] }
  0x10   :  { %184 = vperm.xlu1 %1188, %v1286_v2   ;;  %188 = vperm.xlu0 %1189, %v1293_v3   ;;  %v1405_v56 = vrot.slane %v18_v20, %v249_v37  ;;  %v1407_v58 = vrot.slane %v13_v15, %v305_v45  ;;  %v1409_v59 = vrot.slane %v14_v16, %v305_v45 }
  0x11   :  { %v1411_v60 = vrot.slane %v15_v17, %v305_v45  ;;  %v1413_v61 = vrot.slane %v16_v18, %v305_v45  ;;  %v1415_v62 = vrot.slane %v17_v19, %v305_v45  ;;  %v1417_v63 = vrot.slane %v18_v20, %v305_v45 }
  0x12   :  { %v1419_v0 = vrot.slane %v13_v15, %v361_v49  ;;  %v1421_v1 = vrot.slane %v14_v16, %v361_v49  ;;  %v1446_v13 = vrot.slane %v13_v15, %v417_v57  ;;  %v1448_v22 = vrot.slane %v14_v16, %v417_v57  ;;  %v24_v15 = vld [vmem:[%s2121_s0 + $0x58] sm:$0xff] }
  0x13   :  { %v1450_v29 = vrot.slane %v15_v17, %v417_v57  ;;  %v1452_v37 = vrot.slane %v16_v18, %v417_v57  ;;  %v1454_v45 = vrot.slane %v17_v19, %v417_v57 }
  0x14   :  { %1190 = vset.pattern.permute.xlu1 %v1259_v6  ;;  %1191 = vset.pattern.permute.xlu0 %v1260_v7  ;;  %2162 = vst [vmem:[#allocation4_spill] sm:$0xff] %v1419_v0  ;;  %2163 = vst [vmem:[#allocation5_spill] sm:$0xff] %v1421_v1  ;;  %v1429_v6 = vrot.slane %v15_v17, %v361_v49 }
  0x15   :  { %240 = vperm.xlu1 %1190, %v1286_v2   ;;  %296 = vperm.xlu0 %1191, %v1286_v2   ;;  %2168 = vst [vmem:[#allocation10_spill] sm:$0xff] %v1446_v13  ;;  %2169 = vst [vmem:[#allocation11_spill] sm:$0xff] %v1448_v22  ;;  %v1504_v13 = vrot.slane %v23_v12, %v1313_v14 }
  0x16   :  { %2164 = vst [vmem:[#allocation6_spill] sm:$0xff] %v1429_v6  ;;  %2170 = vst [vmem:[#allocation12_spill] sm:$0xff] %v1450_v29 }
  0x17   :  { %2171 = vst [vmem:[#allocation13_spill] sm:$0xff] %v1452_v37  ;;  %2172 = vst [vmem:[#allocation14_spill] sm:$0xff] %v1454_v45 }
  0x19   :  { %244 = vperm.xlu1 %1190, %v1293_v3   ;;  %1194 = vset.pattern.permute.xlu0 %v1261_v8 }
  0x1a   :  { %356 = vperm.xlu0 %1194, %v1293_v3  }
  0x1d   :  { %1192 = vset.pattern.permute.xlu1 %v1260_v7  ;;  %v1431_v7 = vrot.slane %v16_v18, %v361_v49 }
  0x1e   :  { %300 = vperm.xlu1 %1192, %v1293_v3   ;;  %1196 = vset.pattern.permute.xlu0 %v1262_v9 }
  0x1f   :  { %464 = vperm.xlu0 %1196, %v1286_v2   ;;  %2165 = vst [vmem:[#allocation7_spill] sm:$0xff] %v1431_v7 }
  0x22   :  { %1193 = vset.pattern.permute.xlu1 %v1261_v8  ;;  %v1433_v8 = vrot.slane %v17_v19, %v361_v49  ;;  %v1474_v19 = vrot.slane %v23_v12, %v1333_v21 }
  0x23   :  { %352 = vperm.xlu1 %1193, %v1286_v2   ;;  %1199 = vset.pattern.permute.xlu0 %v1263_v10 }
  0x24   :  { %524 = vperm.xlu0 %1199, %v1293_v3   ;;  %2166 = vst [vmem:[#allocation8_spill] sm:$0xff] %v1433_v8  ;;  %2178 = vst [vmem:[#allocation20_spill] sm:$0xff] %v1474_v19 }
  0x27   :  { %1195 = vset.pattern.permute.xlu1 %v1264_v11  ;;  %v22_v11 = vld [vmem:[%s2121_s0 + $0x48] sm:$0xff] }
  0x28   :  { %408 = vperm.xlu1 %1195, %v1286_v2   ;;  %v1471_v18 = vrot.slane %v22_v11, %v1333_v21  ;;  %v1490_v45 = vrot.slane %v22_v11, %v1313_v14 }
  0x2a   :  { %2177 = vst [vmem:[#allocation19_spill] sm:$0xff] %v1471_v18  ;;  %2182 = vst [vmem:[#allocation24_spill] sm:$0xff] %v1490_v45 }
  0x2c   :  { %412 = vperm.xlu1 %1195, %v1293_v3  }
  0x30   :  { %1197 = vset.pattern.permute.xlu1 %v1262_v9  ;;  %v1435_v9 = vrot.slane %v18_v20, %v361_v49  ;;  %v1456_v49 = vrot.slane %v18_v20, %v417_v57  ;;  %v1477_v20 = vrot.slane %v19_v4, %v1313_v14 }
  0x31   :  { %468 = vperm.xlu1 %1197, %v1293_v3   ;;  %v1462_v3 = vrot.slane %v20_v5, %v1333_v21 }
  0x32   :  { %2167 = vst [vmem:[#allocation9_spill] sm:$0xff] %v1435_v9  ;;  %2173 = vst [vmem:[#allocation15_spill] sm:$0xff] %v1456_v49  ;;  %v1507_v9 = vrot.slane %v24_v15, %v1313_v14 }
  0x33   :  { %2175 = vst [vmem:[#allocation17_spill] sm:$0xff] %v1462_v3  ;;  %2179 = vst [vmem:[#allocation21_spill] sm:$0xff] %v1477_v20 }
  0x35   :  { %1198 = vset.pattern.permute.xlu1 %v1263_v10  ;;  %v21_v10 = vld [vmem:[%s2121_s0 + $0x40] sm:$0xff]  ;;  %s1267_s0 = smov 1  }
  0x36   :  { %520 = vperm.xlu1 %1198, %v1286_v2   ;;  %v1459_v2 = vrot.slane %v19_v4, %v1333_v21  ;;  %v1468_v17 = vrot.slane %v21_v10, %v1333_v21  ;;  %v1485_v49 = vrot.slane %v21_v10, %v1313_v14  ;;  %v1493_v4 = vrot.slane %v24_v15, %v1333_v21 }
  0x38   :  { %2174 = vst [vmem:[#allocation16_spill] sm:$0xff] %v1459_v2  ;;  %2176 = vst [vmem:[#allocation18_spill] sm:$0xff] %v1468_v17  ;;  %v1482_v2 = vrot.slane %v20_v5, %v1313_v14 }
  0x39   :  { %2181 = vst [vmem:[#allocation23_spill] sm:$0xff] %v1485_v49  ;;  %2183 = vst [vmem:[#allocation25_spill] sm:$0xff] %v1493_v4 }
  0x3a   :  { %2180 = vst [vmem:[#allocation22_spill] sm:$0xff] %v1482_v2 }
  0x7d   :  { %v73_v16 = vpop.permute.xlu1 %72  ;;  %v28_v22 = vpop.permute.xlu0 %27 }
  0x7e   :  { %v103_v57 = vmul.f32 %v1336_v23, %v73_v16  ;;  %v104_v3 = vmul.f32 %v1339_v24, %v73_v16  ;;  %v59_v17 = vmul.f32 %v1354_v30, %v28_v22  ;;  %v60_v18 = vmul.f32 %v1357_v31, %v28_v22 }
  0x7f   :  { %v105_v20 = vmul.f32 %v1342_v25, %v73_v16  ;;  %v106_v19 = vmul.f32 %v1345_v26, %v73_v16  ;;  %v61_v5 = vmul.f32 %v1360_v32, %v28_v22  ;;  %v62_v2 = vmul.f32 %v1363_v33, %v28_v22 }
  0x80   :  { %v107_v10 = vmul.f32 %v1348_v27, %v73_v16  ;;  %v108_v49 = vmul.f32 %v1351_v28, %v73_v16  ;;  %v63_v37 = vmul.f32 %v1366_v34, %v28_v22  ;;  %v64_v11 = vmul.f32 %v1369_v35, %v28_v22 }
  0x81   :  { %v77_v45 = vpop.permute.xlu1 %76  ;;  %v33_v29 = vpop.permute.xlu0 %32  ;;  %v115_v21 = vadd.f32 %v103_v57, %v59_v17  ;;  %v116_v4 = vadd.f32 %v104_v3, %v60_v18  ;;  %v117_v1 = vadd.f32 %v105_v20, %v61_v5  ;;  %v118_v22 = vadd.f32 %v106_v19, %v62_v2 }
  0x82   :  { %v109_v8 = vmul.f32 %v1336_v23, %v77_v45  ;;  %v110_v7 = vmul.f32 %v1339_v24, %v77_v45  ;;  %v111_v16 = vmul.f32 %v1342_v25, %v77_v45  ;;  %v112_v6 = vmul.f32 %v1345_v26, %v77_v45 }
  0x83   :  { %v65_v0 = vmul.f32 %v1354_v30, %v33_v29  ;;  %v66_v3 = vmul.f32 %v1357_v31, %v33_v29  ;;  %v119_v17 = vadd.f32 %v107_v10, %v63_v37  ;;  %v120_v12 = vadd.f32 %v108_v49, %v64_v11 }
  0x84   :  { %v67_v18 = vmul.f32 %v1360_v32, %v33_v29  ;;  %v68_v14 = vmul.f32 %v1363_v33, %v33_v29  ;;  %v113_v23 = vmul.f32 %v1348_v27, %v77_v45  ;;  %v114_v24 = vmul.f32 %v1351_v28, %v77_v45 }
  0x85   :  { %v69_v25 = vmul.f32 %v1366_v34, %v33_v29  ;;  %v70_v26 = vmul.f32 %v1369_v35, %v33_v29  ;;  %v121_v19 = vadd.f32 %v109_v8, %v65_v0  ;;  %v122_v30 = vadd.f32 %v110_v7, %v66_v3 }
  0x86   :  { %v133_v15 = vpop.permute.xlu1 %132  ;;  %v129_v2 = vpop.permute.xlu0 %128  ;;  %v123_v20 = vadd.f32 %v111_v16, %v67_v18  ;;  %v124_v31 = vadd.f32 %v112_v6, %v68_v14 }
  0x87   :  { %v165_v37 = vmul.f32 %v1371_v36, %v133_v15  ;;  %v166_v32 = vmul.f32 %v1373_v38, %v133_v15  ;;  %v167_v33 = vmul.f32 %v1375_v39, %v133_v15  ;;  %v168_v27 = vmul.f32 %v1377_v40, %v133_v15 }
  0x88   :  { %v169_v28 = vmul.f32 %v1379_v41, %v133_v15  ;;  %v170_v34 = vmul.f32 %v1381_v42, %v133_v15  ;;  %v159_v35 = vmul.f32 %v1371_v36, %v129_v2  ;;  %v160_v29 = vmul.f32 %v1373_v38, %v129_v2 }
  0x89   :  { %v125_v0 = vadd.f32 %v113_v23, %v69_v25  ;;  %v126_v7 = vadd.f32 %v114_v24, %v70_v26  ;;  %v177_v8 = vadd.f32 %v165_v37, %v121_v19  ;;  %v178_v6 = vadd.f32 %v166_v32, %v122_v30 }
  0x8a   :  { %v179_v45 = vadd.f32 %v167_v33, %v123_v20  ;;  %v180_v49 = vadd.f32 %v168_v27, %v124_v31  ;;  %v161_v57 = vmul.f32 %v1375_v39, %v129_v2  ;;  %v162_v5 = vmul.f32 %v1377_v40, %v129_v2 }
  0x8b   :  { %v185_v10 = vpop.permute.xlu1 %184  ;;  %v181_v11 = vadd.f32 %v169_v28, %v125_v0  ;;  %v182_v16 = vadd.f32 %v170_v34, %v126_v7  ;;  %v163_v3 = vmul.f32 %v1379_v41, %v129_v2  ;;  %v164_v18 = vmul.f32 %v1381_v42, %v129_v2  ;;  %v189_v24 = vpop.permute.xlu0 %188 }
  0x8c   :  { %v171_v36 = vadd.f32 %v159_v35, %v115_v21  ;;  %v172_v14 = vadd.f32 %v160_v29, %v116_v4  ;;  %v215_v38 = vmul.f32 %v1383_v43, %v185_v10  ;;  %v216_v23 = vmul.f32 %v1385_v44, %v185_v10 }
  0x8d   :  { %v173_v25 = vadd.f32 %v161_v57, %v117_v1  ;;  %v174_v26 = vadd.f32 %v162_v5, %v118_v22  ;;  %v217_v39 = vmul.f32 %v1387_v46, %v185_v10  ;;  %v218_v40 = vmul.f32 %v1389_v47, %v185_v10 }
  0x8e   :  { %v175_v15 = vadd.f32 %v163_v3, %v119_v17  ;;  %v176_v19 = vadd.f32 %v164_v18, %v120_v12  ;;  %v219_v30 = vmul.f32 %v1391_v48, %v185_v10  ;;  %v220_v41 = vmul.f32 %v1393_v50, %v185_v10 }
  0x8f   :  { %v227_v42 = vadd.f32 %v215_v38, %v171_v36  ;;  %v228_v21 = vadd.f32 %v216_v23, %v172_v14  ;;  %v221_v4 = vmul.f32 %v1383_v43, %v189_v24  ;;  %v222_v2 = vmul.f32 %v1385_v44, %v189_v24 }
  0x90   :  { %v241_v20 = vpop.permute.xlu1 %240  ;;  %v229_v31 = vadd.f32 %v217_v39, %v173_v25  ;;  %v230_v1 = vadd.f32 %v218_v40, %v174_v26  ;;  %v223_v22 = vmul.f32 %v1387_v46, %v189_v24  ;;  %v224_v37 = vmul.f32 %v1389_v47, %v189_v24  ;;  %v297_v44 = vpop.permute.xlu0 %296 }
  0x91   :  { %v231_v32 = vadd.f32 %v219_v30, %v175_v15  ;;  %v232_v17 = vadd.f32 %v220_v41, %v176_v19  ;;  %v225_v12 = vmul.f32 %v1391_v48, %v189_v24  ;;  %v226_v33 = vmul.f32 %v1393_v50, %v189_v24 }
  0x92   :  { %v233_v27 = vadd.f32 %v221_v4, %v177_v8  ;;  %v234_v28 = vadd.f32 %v222_v2, %v178_v6  ;;  %v271_v34 = vmul.f32 %v1395_v51, %v241_v20  ;;  %v272_v43 = vmul.f32 %v1397_v52, %v241_v20 }
  0x93   :  { %v235_v35 = vadd.f32 %v223_v22, %v179_v45  ;;  %v236_v29 = vadd.f32 %v224_v37, %v180_v49  ;;  %v273_v0 = vmul.f32 %v1399_v53, %v241_v20  ;;  %v274_v46 = vmul.f32 %v1401_v54, %v241_v20 }
  0x94   :  { %v245_v47 = vpop.permute.xlu1 %244  ;;  %v275_v7 = vmul.f32 %v1403_v55, %v241_v20  ;;  %v276_v48 = vmul.f32 %v1405_v56, %v241_v20  ;;  %v283_v57 = vadd.f32 %v271_v34, %v227_v42  ;;  %v284_v50 = vadd.f32 %v272_v43, %v228_v21  ;;  %v2186_v43 = vld [vmem:[#allocation6_spill] sm:$0xff] }
  0x95   :  { %v285_v8 = vadd.f32 %v273_v0, %v229_v31  ;;  %v286_v6 = vadd.f32 %v274_v46, %v230_v1  ;;  %v327_v5 = vmul.f32 %v1407_v58, %v297_v44  ;;  %v328_v10 = vmul.f32 %v1409_v59, %v297_v44  ;;  %v2189_v0 = vld [vmem:[#allocation9_spill] sm:$0xff] }
  0x96   :  { %v237_v3 = vadd.f32 %v225_v12, %v181_v11  ;;  %v287_v45 = vadd.f32 %v275_v7, %v231_v32  ;;  %v329_v49 = vmul.f32 %v1411_v60, %v297_v44  ;;  %v330_v18 = vmul.f32 %v1413_v61, %v297_v44 }
  0x97   :  { %v238_v36 = vadd.f32 %v226_v33, %v182_v16  ;;  %v288_v14 = vadd.f32 %v276_v48, %v232_v17  ;;  %v331_v38 = vmul.f32 %v1415_v62, %v297_v44  ;;  %v332_v23 = vmul.f32 %v1417_v63, %v297_v44  ;;  %v2184_v33 = vld [vmem:[#allocation4_spill] sm:$0xff] }
  0x98   :  { %v339_v24 = vadd.f32 %v327_v5, %v283_v57  ;;  %v340_v25 = vadd.f32 %v328_v10, %v284_v50  ;;  %v277_v26 = vmul.f32 %v1395_v51, %v245_v47  ;;  %v278_v39 = vmul.f32 %v1397_v52, %v245_v47  ;;  %v357_v52 = vpop.permute.xlu0 %356 }
  0x99   :  { %v301_v40 = vpop.permute.xlu1 %300  ;;  %v341_v15 = vadd.f32 %v329_v49, %v285_v8  ;;  %v342_v11 = vadd.f32 %v330_v18, %v286_v6  ;;  %v279_v19 = vmul.f32 %v1399_v53, %v245_v47  ;;  %v280_v30 = vmul.f32 %v1401_v54, %v245_v47  ;;  %v2190_v18 = vld [vmem:[#allocation10_spill] sm:$0xff] }
  0x9a   :  { %v343_v41 = vadd.f32 %v331_v38, %v287_v45  ;;  %v281_v16 = vmul.f32 %v1403_v55, %v245_v47  ;;  %v282_v42 = vmul.f32 %v1405_v56, %v245_v47  ;;  %v289_v21 = vadd.f32 %v277_v26, %v233_v27  ;;  %v2185_v27 = vld [vmem:[#allocation5_spill] sm:$0xff] }
  0x9b   :  { %v290_v4 = vadd.f32 %v278_v39, %v234_v28  ;;  %v291_v2 = vadd.f32 %v279_v19, %v235_v35  ;;  %v333_v20 = vmul.f32 %v1407_v58, %v301_v40  ;;  %v334_v51 = vmul.f32 %v1409_v59, %v301_v40  ;;  %v2191_v39 = vld [vmem:[#allocation11_spill] sm:$0xff] }
  0x9c   :  { %v292_v31 = vadd.f32 %v280_v30, %v236_v29  ;;  %v293_v1 = vadd.f32 %v281_v16, %v237_v3  ;;  %v335_v22 = vmul.f32 %v1411_v60, %v301_v40  ;;  %v336_v53 = vmul.f32 %v1413_v61, %v301_v40  ;;  %v2187_v60 = vld [vmem:[#allocation7_spill] sm:$0xff]  ;;  %v2188_v29 = vld [vmem:[#allocation8_spill] sm:$0xff] }
  0x9d   :  { %v337_v54 = vmul.f32 %v1415_v62, %v301_v40  ;;  %v338_v55 = vmul.f32 %v1417_v63, %v301_v40  ;;  %v345_v37 = vadd.f32 %v333_v20, %v289_v21  ;;  %v346_v56 = vadd.f32 %v334_v51, %v290_v4  ;;  %v2192_v16 = vld [vmem:[#allocation12_spill] sm:$0xff]  ;;  %v2193_v21 = vld [vmem:[#allocation13_spill] sm:$0xff]  ;;  %v2195_v51 = vld [vmem:[#allocation15_spill] sm:$0xff] }
  0x9e   :  { %v353_v32 = vpop.permute.xlu1 %352  ;;  %v294_v17 = vadd.f32 %v282_v42, %v238_v36  ;;  %v347_v12 = vadd.f32 %v335_v22, %v291_v2  ;;  %v389_v58 = vmul.f32 %v2184_v33, %v357_v52  ;;  %v390_v59 = vmul.f32 %v2185_v27, %v357_v52  ;;  %v2194_v2 = vld [vmem:[#allocation14_spill] sm:$0xff] }
  0x9f   :  { %v348_v28 = vadd.f32 %v336_v53, %v292_v31  ;;  %v349_v34 = vadd.f32 %v337_v54, %v293_v1  ;;  %v391_v44 = vmul.f32 %v2186_v43, %v357_v52  ;;  %v392_v35 = vmul.f32 %v2187_v60, %v357_v52 }
  0xa0   :  { %v1573_v61 = vadd.f32 %v332_v23, %v288_v14  ;;  %v350_v62 = vadd.f32 %v338_v55, %v294_v17  ;;  %v393_v63 = vmul.f32 %v2188_v29, %v357_v52  ;;  %v394_v46 = vmul.f32 %v2189_v0, %v357_v52  ;;  %v1586_v14 = vpop.permute.xlu0 %464  ;;  %v2198_v55 = vld [vmem:[#allocation18_spill] sm:$0xff]  ;;  %v2200_v17 = vld [vmem:[#allocation20_spill] sm:$0xff] }
  0xa1   :  { %v401_v47 = vadd.f32 %v389_v58, %v345_v37  ;;  %v402_v7 = vadd.f32 %v390_v59, %v346_v56  ;;  %v383_v48 = vmul.f32 %v2184_v33, %v353_v32  ;;  %v384_v57 = vmul.f32 %v2185_v27, %v353_v32  ;;  %v2199_v56 = vld [vmem:[#allocation19_spill] sm:$0xff] }
  0xa2   :  { %v403_v50 = vadd.f32 %v391_v44, %v347_v12  ;;  %v385_v8 = vmul.f32 %v2186_v43, %v353_v32  ;;  %v386_v6 = vmul.f32 %v2187_v60, %v353_v32  ;;  %v387_v5 = vmul.f32 %v2188_v29, %v353_v32  ;;  %v2201_v60 = vld [vmem:[#allocation21_spill] sm:$0xff] }
  0xa3   :  { %v409_v10 = vpop.permute.xlu1 %408  ;;  %v404_v3 = vadd.f32 %v392_v35, %v348_v28  ;;  %v405_v45 = vadd.f32 %v393_v63, %v349_v34  ;;  %v1583_v49 = vmul.f32 %v2189_v0, %v353_v32  ;;  %v395_v38 = vadd.f32 %v383_v48, %v339_v24  ;;  %v2196_v24 = vld [vmem:[#allocation16_spill] sm:$0xff] }
  0xa4   :  { %v439_v36 = vmul.f32 %v2190_v18, %v409_v10  ;;  %v396_v23 = vadd.f32 %v384_v57, %v340_v25  ;;  %v397_v26 = vadd.f32 %v385_v8, %v341_v15  ;;  %v440_v40 = vmul.f32 %v2191_v39, %v409_v10  ;;  %v525_v54 = vpop.permute.xlu0 %524  ;;  %v2202_v57 = vld [vmem:[#allocation22_spill] sm:$0xff] }
  0xa5   :  { %v398_v19 = vadd.f32 %v386_v6, %v342_v11  ;;  %v1589_v30 = vadd.f32 %v387_v5, %v343_v41  ;;  %v441_v42 = vmul.f32 %v2192_v16, %v409_v10  ;;  %v442_v4 = vmul.f32 %v2193_v21, %v409_v10  ;;  %v2197_v41 = vld [vmem:[#allocation17_spill] sm:$0xff] }
  0xa6   :  { %v1594_v20 = vmul.f32 %v2194_v2, %v409_v10  ;;  %v1597_v52 = vmul.f32 %v2195_v51, %v409_v10  ;;  %v451_v31 = vadd.f32 %v439_v36, %v395_v38  ;;  %v495_v25 = vmul.f32 %v2196_v24, %v1586_v14  ;;  %v2203_v38 = vld [vmem:[#allocation23_spill] sm:$0xff] }
  0xa7   :  { %v413_v15 = vpop.permute.xlu1 %412  ;;  %v452_v1 = vadd.f32 %v440_v40, %v396_v23  ;;  %v453_v22 = vadd.f32 %v441_v42, %v397_v26  ;;  %v454_v11 = vadd.f32 %v442_v4, %v398_v19  ;;  %v496_v53 = vmul.f32 %v2197_v41, %v1586_v14  ;;  %v2204_v23 = vld [vmem:[#allocation24_spill] sm:$0xff] }
  0xa8   :  { %v497_v37 = vmul.f32 %v2198_v55, %v1586_v14  ;;  %v498_v32 = vmul.f32 %v2199_v56, %v1586_v14  ;;  %v499_v12 = vmul.f32 %v2200_v17, %v1586_v14  ;;  %v445_v33 = vmul.f32 %v2190_v18, %v413_v15 }
  0xa9   :  { %v507_v58 = vadd.f32 %v495_v25, %v451_v31  ;;  %v446_v27 = vmul.f32 %v2191_v39, %v413_v15  ;;  %v447_v59 = vmul.f32 %v2192_v16, %v413_v15  ;;  %v448_v28 = vmul.f32 %v2193_v21, %v413_v15  ;;  %v2205_v16 = vld [vmem:[#allocation25_spill] sm:$0xff] }
  0xaa   :  { %v449_v34 = vmul.f32 %v2194_v2, %v413_v15  ;;  %v450_v43 = vmul.f32 %v2195_v51, %v413_v15  ;;  %v457_v44 = vadd.f32 %v445_v33, %v401_v47  ;;  %v557_v35 = vmul.f32 %v2201_v60, %v525_v54 }
  0xab   :  { %v458_v29 = vadd.f32 %v446_v27, %v402_v7  ;;  %v459_v63 = vadd.f32 %v447_v59, %v403_v50  ;;  %v460_v0 = vadd.f32 %v448_v28, %v404_v3  ;;  %v558_v8 = vmul.f32 %v2202_v57, %v525_v54 }
  0xac   :  { %v469_v48 = vpop.permute.xlu1 %468  ;;  %v559_v47 = vmul.f32 %v2203_v38, %v525_v54  ;;  %v560_v26 = vmul.f32 %v2204_v23, %v525_v54  ;;  %v406_v7 = vadd.f32 %v394_v46, %v350_v62  ;;  %v461_v40 = vadd.f32 %v449_v34, %v405_v45 }
  0xad   :  { %v501_v6 = vmul.f32 %v2196_v24, %v469_v48  ;;  %v502_v5 = vmul.f32 %v2197_v41, %v469_v48  ;;  %v503_v10 = vmul.f32 %v2198_v55, %v469_v48  ;;  %v504_v18 = vmul.f32 %v2199_v56, %v469_v48 }
  0xae   :  { %v505_v36 = vmul.f32 %v2200_v17, %v469_v48  ;;  %v462_v19 = vadd.f32 %v450_v43, %v406_v7  ;;  %v506_v42 = vmul.f32 %v2205_v16, %v469_v48  ;;  %v561_v4 = vmul.f32 %v1504_v13, %v525_v54 }
  0xaf   :  { %v513_v50 = vadd.f32 %v501_v6, %v457_v44  ;;  %v514_v3 = vadd.f32 %v502_v5, %v458_v29  ;;  %v515_v39 = vadd.f32 %v503_v10, %v459_v63  ;;  %v516_v21 = vadd.f32 %v504_v18, %v460_v0 }
  0xb0   :  { %v517_v24 = vadd.f32 %v505_v36, %v461_v40  ;;  %v562_v25 = vmul.f32 %v1507_v9, %v525_v54  ;;  %v508_v15 = vadd.f32 %v496_v53, %v452_v1  ;;  %v509_v41 = vadd.f32 %v497_v37, %v453_v22 }
  0xb1   :  { %v569_v2 = vadd.f32 %v557_v35, %v513_v50  ;;  %v570_v51 = vadd.f32 %v558_v8, %v514_v3  ;;  %v521_v31 = vpop.permute.xlu1 %520  ;;  %v518_v55 = vadd.f32 %v506_v42, %v462_v19  ;;  %v571_v56 = vadd.f32 %v559_v47, %v515_v39 }
  0xb2   :  { %v551_v62 = vmul.f32 %v2201_v60, %v521_v31  ;;  %v552_v46 = vmul.f32 %v2202_v57, %v521_v31  ;;  %v553_v45 = vmul.f32 %v2203_v38, %v521_v31  ;;  %v572_v17 = vadd.f32 %v560_v26, %v516_v21 }
  0xb3   :  { %v554_v33 = vmul.f32 %v2204_v23, %v521_v31  ;;  %v573_v27 = vadd.f32 %v561_v4, %v517_v24  ;;  %v1631_v59 = vmax.f32 %v569_v2, 0.0  ;;  %v1633_v28 = vmax.f32 %v570_v51, 0.0 }
  0xb4   :  { %v563_v34 = vadd.f32 %v551_v62, %v507_v58  ;;  %v564_v54 = vadd.f32 %v552_v46, %v508_v15  ;;  %v574_v1 = vadd.f32 %v562_v25, %v518_v55  ;;  %v1635_v22 = vmax.f32 %v571_v56, 0.0 }
  0xb5   :  { %v594_v53 = vadd.f32 %v1633_v28, %v1631_v59  ;;  %v400_v37 = vadd.f32 %v1583_v49, %v1573_v61  ;;  %v455_v43 = vadd.f32 %v1594_v20, %v1589_v30  ;;  %v500_v44 = vmul.f32 %v2205_v16, %v1586_v14 }
  0xb6   :  { %v1645_v60 = vmax.f32 %v572_v17, 0.0  ;;  %v510_v35 = vadd.f32 %v498_v32, %v454_v11  ;;  %v555_v58 = vmul.f32 %v1504_v13, %v521_v31  ;;  %v556_v29 = vmul.f32 %v1507_v9, %v521_v31 }
  0xb7   :  { %v595_v63 = vadd.f32 %v594_v53, %v1635_v22  ;;  %v456_v0 = vadd.f32 %v1597_v52, %v400_v37  ;;  %v511_v48 = vadd.f32 %v499_v12, %v455_v43  ;;  %v565_v57 = vadd.f32 %v553_v45, %v509_v41 }
  0xb8   :  { %v566_v61 = vadd.f32 %v554_v33, %v510_v35  ;;  %v1651_v49 = vmax.f32 %v563_v34, 0.0  ;;  %v1653_v30 = vmax.f32 %v564_v54, 0.0  ;;  %v607_v14 = vmul.f32 %v1631_v59, %v1631_v59 }
  0xb9   :  { %v1657_v20 = vmax.f32 %v573_v27, 0.0  ;;  %v596_v13 = vadd.f32 %v595_v63, %v1645_v60  ;;  %v512_v11 = vadd.f32 %v500_v44, %v456_v0  ;;  %v567_v9 = vadd.f32 %v555_v58, %v511_v48 }
  0xba   :  { %v1660_v32 = vmax.f32 %v565_v57, 0.0  ;;  %v587_v52 = vadd.f32 %v1653_v30, %v1651_v49  ;;  %v608_v12 = vmul.f32 %v1633_v28, %v1633_v28  ;;  %v1666_v8 = vmax.f32 %v574_v1, 0.0 }
  0xbb   :  { %v597_v6 = vadd.f32 %v596_v13, %v1657_v20  ;;  %v1669_v5 = vmax.f32 %v566_v61, 0.0  ;;  %v568_v10 = vadd.f32 %v556_v29, %v512_v11  ;;  %v609_v36 = vmul.f32 %v1635_v22, %v1635_v22 }
  0xbc   :  { %v588_v18 = vadd.f32 %v587_v52, %v1660_v32  ;;  %v620_v38 = vadd.f32 %v608_v12, %v607_v14  ;;  %v601_v23 = vmul.f32 %v1651_v49, %v1651_v49  ;;  %v602_v26 = vmul.f32 %v1653_v30, %v1653_v30  ;;  %v2206_v14 = vld [vmem:[#allocation3_spill] sm:$0xff]  ;;  %v2207_v52 = vld [vmem:[#allocation2_spill] sm:$0xff] }
  0xbd   :  { %v598_v47 = vadd.f32 %v597_v6, %v1666_v8  ;;  %v1679_v7 = vmax.f32 %v567_v9, 0.0  ;;  %v610_v3 = vmul.f32 %v1645_v60, %v1645_v60  ;;  %v603_v40 = vmul.f32 %v1660_v32, %v1660_v32 }
  0xbe   :  { %v589_v50 = vadd.f32 %v588_v18, %v1669_v5  ;;  %v621_v39 = vadd.f32 %v620_v38, %v609_v36  ;;  %v613_v19 = vadd.f32 %v602_v26, %v601_v23  ;;  %v1686_v16 = vmax.f32 %v568_v10, 0.0 }
  0xbf   :  { %599 = vadd.xlane.f32.xlu0 %v598_v47  ;;  %v611_v21 = vmul.f32 %v1657_v20, %v1657_v20  ;;  %v604_v2 = vmul.f32 %v1669_v5, %v1669_v5  ;;  %v612_v24 = vmul.f32 %v1666_v8, %v1666_v8  ;;  %v605_v15 = vmul.f32 %v1679_v7, %v1679_v7 }
  0xc0   :  { %v590_v42 = vadd.f32 %v589_v50, %v1679_v7  ;;  %v622_v4 = vadd.f32 %v621_v39, %v610_v3  ;;  %v614_v51 = vadd.f32 %v613_v19, %v603_v40  ;;  %v606_v46 = vmul.f32 %v1686_v16, %v1686_v16 }
  0xc1   :  { %v1265_v56 = vmov 16   ;;  %v1266_v57 = vmov 17  }
  0xc2   :  { %v591_v31 = vadd.f32 %v590_v42, %v1686_v16  ;;  %v623_v25 = vadd.f32 %v622_v4, %v611_v21  ;;  %v615_v41 = vadd.f32 %v614_v51, %v604_v2  ;;  %1200 = vset.pattern.permute.xlu1 %v1265_v56  ;;  %1201 = vset.pattern.permute.xlu0 %v1266_v57 }
  0xc4   :  { %592 = vadd.xlane.f32.xlu1 %v591_v31  ;;  %v624_v62 = vadd.f32 %v623_v25, %v612_v24  ;;  %v616_v45 = vadd.f32 %v615_v41, %v605_v15 }
  0xc6   :  { %625 = vadd.xlane.f32.xlu0 %v624_v62  ;;  %v617_v55 = vadd.f32 %v616_v45, %v606_v46 }
  0xc8   :  { %618 = vadd.xlane.f32.xlu1 %v617_v55 }
 0x148   :  { %v600_v17 = vpop.xlane.xlu0 %599 }
 0x149   :  { %v628_v33 = vmul.f32 0.0015432099, %v600_v17 }
 0x14b   :  { %v632_v1 = vmul.f32 %v628_v33, %v628_v33 }
 0x14d   :  { %v593_v27 = vpop.xlane.xlu1 %592 }
 0x14e   :  { %v627_v34 = vmul.f32 0.0015432099, %v593_v27 }
 0x14f   :  { %v626_v54 = vpop.xlane.xlu0 %625 }
 0x150   :  { %v630_v53 = vmul.f32 0.0015432099, %v626_v54  ;;  %v631_v44 = vmul.f32 %v627_v34, %v627_v34 }
 0x151   :  { %v619_v43 = vpop.xlane.xlu1 %618 }
 0x152   :  { %v634_v37 = vsub.f32 %v630_v53, %v632_v1  ;;  %v629_v35 = vmul.f32 0.0015432099, %v619_v43 }
 0x154   :  { %v636_v58 = vmax.f32 %v634_v37, 0.0  ;;  %v633_v29 = vsub.f32 %v629_v35, %v631_v44 }
 0x156   :  { %v638_v63 = vadd.f32 1e-05, %v636_v58  ;;  %v635_v0 = vmax.f32 %v633_v29, 0.0 }
 0x158   :  { %1203 = vrsqrt.f32 %v638_v63  ;;  %v637_v48 = vadd.f32 1e-05, %v635_v0 }
 0x15a   :  { %1205 = vrsqrt.f32 %v637_v48 }
 0x165   :  { %v1204_v61 = vpop.eup %1203 }
 0x166   :  { %v642_v13 = vmul.f32 %v1204_v61, %v2206_v14 }
 0x167   :  { %v1206_v11 = vpop.eup %1205 }
 0x168   :  { %v644_v9 = vmul.f32 %v642_v13, %v628_v33  ;;  %v641_v12 = vmul.f32 %v1206_v11, %v2207_v52 }
 0x16a   :  { %649 = vrot.lane.b32.xlu0 %v644_v9, %s1267_s0  ;;  %v643_v6 = vmul.f32 %v641_v12, %v627_v34 }
 0x16c   :  { %647 = vrot.lane.b32.xlu1 %v643_v6, %s1267_s0 }
 0x170   :  { %657 = vperm.xlu1 %1200, %v641_v12  }
 0x174   :  { %662 = vperm.xlu1 %1200, %v642_v13  }
 0x178   :  { %1202 = vset.pattern.permute.xlu1 %v1266_v57 }
 0x1dc   :  { %v650_v10 = vpop.permute.xlu0 %649 }
 0x1dd   :  { %v654_v18 = vsub.f32 %v2206_v14, %v650_v10 }
 0x1de   :  { %v648_v36 = vpop.permute.xlu1 %647 }
 0x1df   :  { %684 = vperm.xlu1 %1202, %v654_v18   ;;  %v653_v38 = vsub.f32 %v2207_v52, %v648_v36 }
 0x1e1   :  { %679 = vperm.xlu0 %1201, %v653_v38  }
 0x1eb   :  { %v658_v47 = vpop.permute.xlu1 %657 }
 0x1ec   :  { %v665_v44 = vmul.f32 %v658_v47, %v1651_v49  ;;  %v666_v58 = vmul.f32 %v658_v47, %v1653_v30  ;;  %v667_v29 = vmul.f32 %v658_v47, %v1660_v32  ;;  %v668_v48 = vmul.f32 %v658_v47, %v1669_v5 }
 0x1ed   :  { %v669_v49 = vmul.f32 %v658_v47, %v1679_v7  ;;  %v670_v14 = vmul.f32 %v658_v47, %v1686_v16 }
 0x1ef   :  { %v663_v23 = vpop.permute.xlu1 %662 }
 0x1f0   :  { %v671_v26 = vmul.f32 %v663_v23, %v1631_v59  ;;  %v672_v50 = vmul.f32 %v663_v23, %v1633_v28  ;;  %v673_v3 = vmul.f32 %v663_v23, %v1635_v22  ;;  %v674_v39 = vmul.f32 %v663_v23, %v1645_v60 }
 0x1f1   :  { %v675_v40 = vmul.f32 %v663_v23, %v1657_v20  ;;  %v676_v19 = vmul.f32 %v663_v23, %v1666_v8 }
 0x25a   :  { %v685_v42 = vpop.permute.xlu1 %684 }
 0x25b   :  { %v1710_v21 = vadd.f32 %v685_v42, %v671_v26  ;;  %v1712_v4 = vadd.f32 %v685_v42, %v672_v50  ;;  %v1714_v2 = vadd.f32 %v685_v42, %v673_v3  ;;  %v1716_v51 = vadd.f32 %v685_v42, %v674_v39 }
 0x25c   :  { %v1718_v59 = vadd.f32 %v685_v42, %v675_v40  ;;  %v1720_v28 = vadd.f32 %v685_v42, %v676_v19  ;;  %v680_v37 = vpop.permute.xlu0 %679 }
 0x25d   :  { %v1723_v22 = vmul.f32 0.70710677, %v1710_v21  ;;  %v1726_v60 = vmul.f32 0.70710677, %v1712_v4  ;;  %v1729_v20 = vmul.f32 0.70710677, %v1714_v2  ;;  %v1771_v0 = vadd.f32 %v680_v37, %v665_v44 }
 0x25e   :  { %v1732_v8 = vmul.f32 0.70710677, %v1716_v51  ;;  %v1735_v31 = vmul.f32 0.70710677, %v1718_v59  ;;  %v1738_v24 = vmul.f32 0.70710677, %v1720_v28  ;;  %v1774_v57 = vadd.f32 %v680_v37, %v666_v58 }
 0x25f   :  { %v1741_v25 = vand.u32 2147483647, %v1723_v22  ;;  %v1744_v15 = vand.u32 2147483647, %v1726_v60  ;;  %v1747_v41 = vand.u32 2147483647, %v1729_v20  ;;  %v1776_v61 = vadd.f32 %v680_v37, %v667_v29 }
 0x260   :  { %v1750_v62 = vand.u32 2147483647, %v1732_v8  ;;  %v1753_v46 = vand.u32 2147483647, %v1735_v31  ;;  %v1756_v45 = vand.u32 2147483647, %v1738_v24  ;;  %v1781_v30 = vadd.f32 %v680_v37, %v668_v48 }
 0x261   :  { %v729_v55 = vmul.f32 0.5, %v1741_v25  ;;  %v730_v56 = vmul.f32 0.5, %v1744_v15  ;;  %v731_v17 = vmul.f32 0.5, %v1747_v41  ;;  %2208 = vst [vmem:[#allocation4_spill] sm:$0xff] %v1771_v0  ;;  %2209 = vst [vmem:[#allocation5_spill] sm:$0xff] %v1774_v57  ;;  %v1784_v32 = vadd.f32 %v680_v37, %v669_v49 }
 0x262   :  { %v732_v33 = vmul.f32 0.5, %v1750_v62  ;;  %v733_v27 = vmul.f32 0.5, %v1753_v46  ;;  %v734_v34 = vmul.f32 0.5, %v1756_v45  ;;  %2210 = vst [vmem:[#allocation6_spill] sm:$0xff] %v1776_v61  ;;  %2211 = vst [vmem:[#allocation7_spill] sm:$0xff] %v1781_v30  ;;  %v1786_v13 = vadd.f32 %v680_v37, %v670_v14 }
 0x263   :  { %v741_v54 = vadd.f32 1.0, %v729_v55  ;;  %v742_v1 = vadd.f32 1.0, %v730_v56  ;;  %v743_v53 = vadd.f32 1.0, %v731_v17  ;;  %2212 = vst [vmem:[#allocation8_spill] sm:$0xff] %v1784_v32  ;;  %v1789_v5 = vmul.f32 0.70710677, %v1771_v0 }
 0x264   :  { %v744_v43 = vadd.f32 1.0, %v732_v33  ;;  %v1765_v35 = vadd.f32 1.0, %v733_v27  ;;  %v1769_v63 = vadd.f32 1.0, %v734_v34  ;;  %2213 = vst [vmem:[#allocation9_spill] sm:$0xff] %v1786_v13  ;;  %v1792_v11 = vmul.f32 0.70710677, %v1774_v57 }
 0x265   :  { %1207 = vrcp.f32 %v741_v54  ;;  %v1795_v7 = vmul.f32 0.70710677, %v1776_v61  ;;  %v1798_v16 = vmul.f32 0.70710677, %v1781_v30  ;;  %v1801_v9 = vmul.f32 0.70710677, %v1784_v32 }
 0x266   :  { %1209 = vrcp.f32 %v742_v1  ;;  %2214 = vst [vmem:[#allocation10_spill] sm:$0xff] %v1792_v11  ;;  %v1804_v52 = vmul.f32 0.70710677, %v1786_v13  ;;  %v1807_v12 = vand.u32 2147483647, %v1789_v5  ;;  %v1017_v58 = vsub.f32 0.0, %v1741_v25 }
 0x267   :  { %1211 = vrcp.f32 %v743_v53  ;;  %2215 = vst [vmem:[#allocation11_spill] sm:$0xff] %v1795_v7  ;;  %2216 = vst [vmem:[#allocation12_spill] sm:$0xff] %v1798_v16  ;;  %v1810_v6 = vand.u32 2147483647, %v1792_v11  ;;  %v1813_v10 = vand.u32 2147483647, %v1795_v7 }
 0x268   :  { %1213 = vrcp.f32 %v744_v43  ;;  %2217 = vst [vmem:[#allocation13_spill] sm:$0xff] %v1801_v9  ;;  %2218 = vst [vmem:[#allocation14_spill] sm:$0xff] %v1804_v52  ;;  %v1816_v18 = vand.u32 2147483647, %v1798_v16  ;;  %v1819_v36 = vand.u32 2147483647, %v1801_v9 }
 0x269   :  { %1215 = vrcp.f32 %v1765_v35  ;;  %v1822_v38 = vand.u32 2147483647, %v1804_v52  ;;  %v723_v47 = vmul.f32 0.5, %v1807_v12  ;;  %v724_v23 = vmul.f32 0.5, %v1810_v6 }
 0x26a   :  { %1217 = vrcp.f32 %v1769_v63  ;;  %v725_v26 = vmul.f32 0.5, %v1813_v10  ;;  %v726_v50 = vmul.f32 0.5, %v1816_v18  ;;  %v727_v3 = vmul.f32 0.5, %v1819_v36 }
 0x26b   :  { %v728_v39 = vmul.f32 0.5, %v1822_v38  ;;  %v1830_v40 = vadd.f32 1.0, %v723_v47  ;;  %v1832_v19 = vadd.f32 1.0, %v724_v23  ;;  %v1018_v29 = vsub.f32 0.0, %v1744_v15 }
 0x26c   :  { %v1834_v42 = vadd.f32 1.0, %v725_v26  ;;  %v1836_v55 = vadd.f32 1.0, %v726_v50  ;;  %v1838_v17 = vadd.f32 1.0, %v727_v3  ;;  %v1019_v47 = vsub.f32 0.0, %v1747_v41 }
 0x26d   :  { %1219 = vrcp.f32 %v1830_v40  ;;  %v1841_v34 = vadd.f32 1.0, %v728_v39  ;;  %v1020_v50 = vsub.f32 0.0, %v1750_v62  ;;  %v1022_v57 = vsub.f32 0.0, %v1756_v45 }
 0x26e   :  { %1221 = vrcp.f32 %v1832_v19  ;;  %vm1101_vm0 = vcmp.ge.f32.partialorder %v1723_v22, 0.0  ;;  %vm1102_vm1 = vcmp.ge.f32.partialorder %v1726_v60, 0.0  ;;  %vm1103_vm2 = vcmp.ge.f32.partialorder %v1729_v20, 0.0 }
 0x26f   :  { %1223 = vrcp.f32 %v1834_v42  ;;  %vm1104_vm3 = vcmp.ge.f32.partialorder %v1732_v8, 0.0  ;;  %vm1105_vm4 = vcmp.ge.f32.partialorder %v1735_v31, 0.0  ;;  %vm1106_vm5 = vcmp.ge.f32.partialorder %v1738_v24, 0.0 }
 0x270   :  { %1225 = vrcp.f32 %v1836_v55  ;;  %vm1095_vm6 = vcmp.ge.f32.partialorder %v1789_v5, 0.0 }
 0x271   :  { %1227 = vrcp.f32 %v1838_v17 }
 0x272   :  { %v1208_v56 = vpop.eup %1207  ;;  %1229 = vrcp.f32 %v1841_v34 }
 0x273   :  { %v1210_v33 = vpop.eup %1209  ;;  %v765_v27 = vmul.f32 %v1208_v56, %v741_v54 }
 0x274   :  { %v1212_v37 = vpop.eup %1211  ;;  %v766_v44 = vmul.f32 %v1210_v33, %v742_v1 }
 0x275   :  { %v1214_v48 = vpop.eup %1213  ;;  %v767_v49 = vmul.f32 %v1212_v37, %v743_v53  ;;  %v777_v14 = vsub.f32 2.0, %v765_v27 }
 0x276   :  { %v1216_v54 = vpop.eup %1215  ;;  %v768_v23 = vmul.f32 %v1214_v48, %v744_v43  ;;  %v778_v26 = vsub.f32 2.0, %v766_v44  ;;  %v1021_v43 = vsub.f32 0.0, %v1753_v46 }
 0x277   :  { %v1218_v1 = vpop.eup %1217  ;;  %v769_v3 = vmul.f32 %v1216_v54, %v1765_v35  ;;  %v779_v39 = vsub.f32 2.0, %v767_v49  ;;  %v1852_v13 = vmul.f32 %v1208_v56, %v777_v14  ;;  %v1867_v14 = vmul.f32 %v1017_v58, %v1741_v25 }
 0x278   :  { %v770_v53 = vmul.f32 %v1218_v1, %v1769_v63  ;;  %v780_v27 = vsub.f32 2.0, %v768_v23  ;;  %v1856_v32 = vmul.f32 %v1210_v33, %v778_v26 }
 0x279   :  { %v781_v44 = vsub.f32 2.0, %v769_v3  ;;  %v1859_v30 = vmul.f32 %v1212_v37, %v779_v39  ;;  %v801_v61 = vmul.f32 0.17087276, %v1852_v13  ;;  %v1873_v37 = vmul.f32 %v1018_v29, %v1744_v15 }
 0x27a   :  { %v782_v35 = vsub.f32 2.0, %v770_v53  ;;  %v1863_v49 = vmul.f32 %v1214_v48, %v780_v27  ;;  %v802_v56 = vmul.f32 0.17087276, %v1856_v32  ;;  %v1879_v48 = vmul.f32 %v1019_v47, %v1747_v41  ;;  %v1220_v27 = vpop.eup %1219 }
 0x27b   :  { %v1869_v63 = vmul.f32 %v1216_v54, %v781_v44  ;;  %v803_v33 = vmul.f32 0.17087276, %v1859_v30  ;;  %v813_v23 = vadd.f32 -0.82215226, %v801_v61  ;;  %v1884_v54 = vmul.f32 %v1020_v50, %v1750_v62 }
 0x27c   :  { %v1875_v26 = vmul.f32 %v1218_v1, %v782_v35  ;;  %v804_v3 = vmul.f32 0.17087276, %v1863_v49  ;;  %v814_v39 = vadd.f32 -0.82215226, %v802_v56  ;;  %v1889_v1 = vmul.f32 %v1021_v43, %v1753_v46  ;;  %v1222_v56 = vpop.eup %1221 }
 0x27d   :  { %v805_v53 = vmul.f32 0.17087276, %v1869_v63  ;;  %v815_v25 = vadd.f32 -0.82215226, %v803_v33  ;;  %v825_v58 = vmul.f32 %v813_v23, %v1852_v13  ;;  %v1893_v35 = vmul.f32 %v1022_v57, %v1756_v45 }
 0x27e   :  { %v806_v61 = vmul.f32 0.17087276, %v1875_v26  ;;  %v816_v15 = vadd.f32 -0.82215226, %v804_v3  ;;  %v826_v29 = vmul.f32 %v814_v39, %v1856_v32  ;;  %v759_v23 = vmul.f32 %v1220_v27, %v1830_v40  ;;  %v1224_v3 = vpop.eup %1223 }
 0x27f   :  { %v817_v44 = vadd.f32 -0.82215226, %v805_v53  ;;  %v827_v41 = vmul.f32 %v815_v25, %v1859_v30  ;;  %v837_v47 = vadd.f32 1.4885159, %v825_v58  ;;  %v760_v53 = vmul.f32 %v1222_v56, %v1832_v19  ;;  %v1226_v25 = vpop.eup %1225 }
 0x280   :  { %v818_v33 = vadd.f32 -0.82215226, %v806_v61  ;;  %v828_v62 = vmul.f32 %v816_v15, %v1863_v49  ;;  %v838_v50 = vadd.f32 1.4885159, %v826_v29  ;;  %v761_v61 = vmul.f32 %v1224_v3, %v1834_v42  ;;  %v1228_v15 = vpop.eup %1227 }
 0x281   :  { %v829_v39 = vmul.f32 %v817_v44, %v1869_v63  ;;  %v839_v46 = vadd.f32 1.4885159, %v827_v41  ;;  %v849_v43 = vmul.f32 %v837_v47, %v1852_v13  ;;  %v762_v44 = vmul.f32 %v1226_v25, %v1836_v55  ;;  %v1230_v41 = vpop.eup %1229 }
 0x282   :  { %v830_v58 = vmul.f32 %v818_v33, %v1875_v26  ;;  %v840_v45 = vadd.f32 1.4885159, %v828_v62  ;;  %v850_v57 = vmul.f32 %v838_v50, %v1856_v32  ;;  %v763_v9 = vmul.f32 %v1228_v15, %v1838_v17 }
 0x283   :  { %v841_v29 = vadd.f32 1.4885159, %v829_v39  ;;  %v851_v40 = vmul.f32 %v839_v46, %v1859_v30  ;;  %v861_v52 = vadd.f32 -1.135204, %v849_v43  ;;  %v764_v42 = vmul.f32 %v1230_v41, %v1841_v34 }
 0x284   :  { %v842_v0 = vadd.f32 1.4885159, %v830_v58  ;;  %v852_v47 = vmul.f32 %v840_v45, %v1863_v49  ;;  %v862_v19 = vadd.f32 -1.135204, %v850_v57  ;;  %v771_v55 = vsub.f32 2.0, %v759_v23 }
 0x285   :  { %v853_v33 = vmul.f32 %v841_v29, %v1869_v63  ;;  %v863_v62 = vadd.f32 -1.135204, %v851_v40  ;;  %v873_v50 = vmul.f32 %v861_v52, %v1852_v13  ;;  %v772_v57 = vsub.f32 2.0, %v760_v53 }
 0x286   :  { %v854_v39 = vmul.f32 %v842_v0, %v1875_v26  ;;  %v864_v46 = vadd.f32 -1.135204, %v852_v47  ;;  %v874_v43 = vmul.f32 %v862_v19, %v1856_v32  ;;  %v773_v40 = vsub.f32 2.0, %v761_v61 }
 0x287   :  { %v865_v16 = vadd.f32 -1.135204, %v853_v33  ;;  %v875_v58 = vmul.f32 %v863_v62, %v1859_v30  ;;  %v885_v45 = vadd.f32 0.27886808, %v873_v50  ;;  %v774_v0 = vsub.f32 2.0, %v762_v44 }
 0x288   :  { %v866_v7 = vadd.f32 -1.135204, %v854_v39  ;;  %v876_v17 = vmul.f32 %v864_v46, %v1863_v49  ;;  %v886_v29 = vadd.f32 0.27886808, %v874_v43  ;;  %v775_v33 = vsub.f32 2.0, %v763_v9 }
 0x289   :  { %v877_v52 = vmul.f32 %v865_v16, %v1869_v63  ;;  %v887_v11 = vadd.f32 0.27886808, %v875_v58  ;;  %v897_v34 = vmul.f32 %v885_v45, %v1852_v13  ;;  %v776_v39 = vsub.f32 2.0, %v764_v42 }
 0x28a   :  { %v878_v47 = vmul.f32 %v866_v7, %v1875_v26  ;;  %v888_v19 = vadd.f32 0.27886808, %v876_v17  ;;  %v898_v23 = vmul.f32 %v886_v29, %v1856_v32  ;;  %v1920_v16 = vmul.f32 %v1220_v27, %v771_v55 }
 0x28b   :  { %v889_v62 = vadd.f32 0.27886808, %v877_v52  ;;  %v899_v53 = vmul.f32 %v887_v11, %v1859_v30  ;;  %v909_v50 = vadd.f32 -0.18628806, %v897_v34  ;;  %v1924_v45 = vmul.f32 %v1222_v56, %v772_v57 }
 0x28c   :  { %v890_v46 = vadd.f32 0.27886808, %v878_v47  ;;  %v900_v61 = vmul.f32 %v888_v19, %v1863_v49  ;;  %v910_v43 = vadd.f32 -0.18628806, %v898_v23  ;;  %v1928_v29 = vmul.f32 %v1224_v3, %v773_v40 }
 0x28d   :  { %v901_v58 = vmul.f32 %v889_v62, %v1869_v63  ;;  %v911_v44 = vadd.f32 -0.18628806, %v899_v53  ;;  %v921_v7 = vmul.f32 %v909_v50, %v1852_v13  ;;  %v1931_v27 = vmul.f32 %v1226_v25, %v774_v0 }
 0x28e   :  { %v902_v9 = vmul.f32 %v890_v46, %v1875_v26  ;;  %v912_v17 = vadd.f32 -0.18628806, %v900_v61  ;;  %v922_v11 = vmul.f32 %v910_v43, %v1856_v32  ;;  %v1934_v23 = vmul.f32 %v1228_v15, %v775_v33 }
 0x28f   :  { %v913_v42 = vadd.f32 -0.18628806, %v901_v58  ;;  %v923_v52 = vmul.f32 %v911_v44, %v1859_v30  ;;  %v933_v34 = vadd.f32 0.09678418, %v921_v7  ;;  %v1938_v53 = vmul.f32 %v1230_v41, %v776_v39 }
 0x290   :  { %v914_v55 = vadd.f32 -0.18628806, %v902_v9  ;;  %v924_v47 = vmul.f32 %v912_v17, %v1863_v49  ;;  %v934_v19 = vadd.f32 0.09678418, %v922_v11  ;;  %v795_v25 = vmul.f32 0.17087276, %v1920_v16 }
 0x291   :  { %v925_v56 = vmul.f32 %v913_v42, %v1869_v63  ;;  %v935_v57 = vadd.f32 0.09678418, %v923_v52  ;;  %v945_v62 = vmul.f32 %v933_v34, %v1852_v13  ;;  %v796_v15 = vmul.f32 0.17087276, %v1924_v45 }
 0x292   :  { %v926_v3 = vmul.f32 %v914_v55, %v1875_v26  ;;  %v936_v40 = vadd.f32 0.09678418, %v924_v47  ;;  %v946_v50 = vmul.f32 %v934_v19, %v1856_v32  ;;  %v797_v41 = vmul.f32 0.17087276, %v1928_v29 }
 0x293   :  { %v937_v0 = vadd.f32 0.09678418, %v925_v56  ;;  %v947_v46 = vmul.f32 %v935_v57, %v1859_v30  ;;  %v957_v61 = vadd.f32 0.37409195, %v945_v62  ;;  %v798_v9 = vmul.f32 0.17087276, %v1931_v27 }
 0x294   :  { %v938_v33 = vadd.f32 0.09678418, %v926_v3  ;;  %v948_v43 = vmul.f32 %v936_v40, %v1863_v49  ;;  %v958_v58 = vadd.f32 0.37409195, %v946_v50  ;;  %v799_v52 = vmul.f32 0.17087276, %v1934_v23 }
 0x295   :  { %v949_v39 = vmul.f32 %v937_v0, %v1869_v63  ;;  %v959_v44 = vadd.f32 0.37409195, %v947_v46  ;;  %v969_v7 = vmul.f32 %v957_v61, %v1852_v13  ;;  %v800_v19 = vmul.f32 0.17087276, %v1938_v53 }
 0x296   :  { %v950_v17 = vmul.f32 %v938_v33, %v1875_v26  ;;  %v960_v11 = vadd.f32 0.37409195, %v948_v43  ;;  %v970_v42 = vmul.f32 %v958_v58, %v1856_v32  ;;  %v807_v3 = vadd.f32 -0.82215226, %v795_v25 }
 0x297   :  { %v961_v34 = vadd.f32 0.37409195, %v949_v39  ;;  %v971_v55 = vmul.f32 %v959_v44, %v1859_v30  ;;  %v981_v47 = vadd.f32 1.0000237, %v969_v7  ;;  %v808_v46 = vadd.f32 -0.82215226, %v796_v15 }
 0x298   :  { %v962_v56 = vadd.f32 0.37409195, %v950_v17  ;;  %v972_v57 = vmul.f32 %v960_v11, %v1863_v49  ;;  %v982_v62 = vadd.f32 1.0000237, %v970_v42  ;;  %v809_v58 = vadd.f32 -0.82215226, %v797_v41 }
 0x299   :  { %v973_v40 = vmul.f32 %v961_v34, %v1869_v63  ;;  %v983_v50 = vadd.f32 1.0000237, %v971_v55  ;;  %v993_v0 = vmul.f32 %v981_v47, %v1852_v13  ;;  %v810_v17 = vadd.f32 -0.82215226, %v798_v9 }
 0x29a   :  { %v974_v61 = vmul.f32 %v962_v56, %v1875_v26  ;;  %v984_v33 = vadd.f32 1.0000237, %v972_v57  ;;  %v994_v43 = vmul.f32 %v982_v62, %v1856_v32  ;;  %v811_v34 = vadd.f32 -0.82215226, %v799_v52 }
 0x29b   :  { %v985_v39 = vadd.f32 1.0000237, %v973_v40  ;;  %v995_v44 = vmul.f32 %v983_v50, %v1859_v30  ;;  %v1005_v7 = vadd.f32 -1.2655122, %v993_v0  ;;  %v812_v56 = vadd.f32 -0.82215226, %v800_v19 }
 0x29c   :  { %v986_v11 = vadd.f32 1.0000237, %v974_v61  ;;  %v996_v25 = vmul.f32 %v984_v33, %v1863_v49  ;;  %v1006_v42 = vadd.f32 -1.2655122, %v994_v43  ;;  %v819_v40 = vmul.f32 %v807_v3, %v1920_v16 }
 0x29d   :  { %v997_v55 = vmul.f32 %v985_v39, %v1869_v63  ;;  %v1007_v47 = vadd.f32 -1.2655122, %v995_v44  ;;  %v1041_v15 = vadd.f32 %v1867_v14, %v1005_v7  ;;  %v820_v61 = vmul.f32 %v808_v46, %v1924_v45 }
 0x29e   :  { %v998_v57 = vmul.f32 %v986_v11, %v1875_v26  ;;  %v1008_v62 = vadd.f32 -1.2655122, %v996_v25  ;;  %v1042_v41 = vadd.f32 %v1873_v37, %v1006_v42  ;;  %v821_v14 = vmul.f32 %v809_v58, %v1928_v29 }
 0x29f   :  { %v1009_v50 = vadd.f32 -1.2655122, %v997_v55  ;;  %v1043_v9 = vadd.f32 %v1879_v48, %v1007_v47  ;;  %v1059_v0 = vmul.f32 1.442695, %v1041_v15  ;;  %v822_v37 = vmul.f32 %v810_v17, %v1931_v27 }
 0x2a0   :  { %v1010_v52 = vadd.f32 -1.2655122, %v998_v57  ;;  %v1044_v33 = vadd.f32 %v1884_v54, %v1008_v62  ;;  %v1061_v43 = vmul.f32 1.442695, %v1042_v41  ;;  %v823_v48 = vmul.f32 %v811_v34, %v1934_v23 }
 0x2a1   :  { %v1045_v19 = vadd.f32 %v1889_v1, %v1009_v50  ;;  %1231 = vpow2.f32 %v1059_v0  ;;  %v1063_v39 = vmul.f32 1.442695, %v1043_v9  ;;  %v824_v7 = vmul.f32 %v812_v56, %v1938_v53 }
 0x2a2   :  { %v1046_v3 = vadd.f32 %v1893_v35, %v1010_v52  ;;  %1233 = vpow2.f32 %v1061_v43  ;;  %v1065_v44 = vmul.f32 1.442695, %v1044_v33  ;;  %v831_v54 = vadd.f32 1.4885159, %v819_v40 }
 0x2a3   :  { %1235 = vpow2.f32 %v1063_v39  ;;  %v1067_v46 = vmul.f32 1.442695, %v1045_v19  ;;  %v832_v58 = vadd.f32 1.4885159, %v820_v61  ;;  %v833_v25 = vadd.f32 1.4885159, %v821_v14 }
 0x2a4   :  { %1237 = vpow2.f32 %v1065_v44  ;;  %v1069_v11 = vmul.f32 1.442695, %v1046_v3  ;;  %v834_v1 = vadd.f32 1.4885159, %v822_v37  ;;  %v835_v42 = vadd.f32 1.4885159, %v823_v48 }
 0x2a5   :  { %1239 = vpow2.f32 %v1067_v46  ;;  %v836_v55 = vadd.f32 1.4885159, %v824_v7  ;;  %v843_v35 = vmul.f32 %v831_v54, %v1920_v16  ;;  %v844_v17 = vmul.f32 %v832_v58, %v1924_v45 }
 0x2a6   :  { %1241 = vpow2.f32 %v1069_v11  ;;  %v845_v34 = vmul.f32 %v833_v25, %v1928_v29  ;;  %v846_v47 = vmul.f32 %v834_v1, %v1931_v27  ;;  %v847_v15 = vmul.f32 %v835_v42, %v1934_v23 }
 0x2a7   :  { %v848_v56 = vmul.f32 %v836_v55, %v1938_v53  ;;  %v855_v57 = vadd.f32 -1.135204, %v843_v35  ;;  %v856_v62 = vadd.f32 -1.135204, %v844_v17  ;;  %v1011_v33 = vsub.f32 0.0, %v1807_v12 }
 0x2a8   :  { %v857_v41 = vadd.f32 -1.135204, %v845_v34  ;;  %v858_v40 = vadd.f32 -1.135204, %v846_v47  ;;  %v859_v50 = vadd.f32 -1.135204, %v847_v15 }
 0x2a9   :  { %v860_v9 = vadd.f32 -1.135204, %v848_v56  ;;  %v867_v0 = vmul.f32 %v855_v57, %v1920_v16  ;;  %v868_v61 = vmul.f32 %v856_v62, %v1924_v45  ;;  %v1012_v39 = vsub.f32 0.0, %v1810_v6 }
 0x2aa   :  { %v869_v52 = vmul.f32 %v857_v41, %v1928_v29  ;;  %v870_v43 = vmul.f32 %v858_v40, %v1931_v27  ;;  %v871_v14 = vmul.f32 %v859_v50, %v1934_v23  ;;  %v1013_v1 = vsub.f32 0.0, %v1813_v10 }
 0x2ab   :  { %v872_v19 = vmul.f32 %v860_v9, %v1938_v53  ;;  %v879_v37 = vadd.f32 0.27886808, %v867_v0  ;;  %v880_v3 = vadd.f32 0.27886808, %v868_v61 }
 0x2ac   :  { %v881_v44 = vadd.f32 0.27886808, %v869_v52  ;;  %v882_v48 = vadd.f32 0.27886808, %v870_v43  ;;  %v883_v46 = vadd.f32 0.27886808, %v871_v14 }
 0x2ad   :  { %v884_v7 = vadd.f32 0.27886808, %v872_v19  ;;  %v891_v11 = vmul.f32 %v879_v37, %v1920_v16  ;;  %v892_v58 = vmul.f32 %v880_v3, %v1924_v45 }
 0x2ae   :  { %v1232_v54 = vpop.eup %1231  ;;  %v893_v25 = vmul.f32 %v881_v44, %v1928_v29  ;;  %v894_v35 = vmul.f32 %v882_v48, %v1931_v27  ;;  %v895_v17 = vmul.f32 %v883_v46, %v1934_v23 }
 0x2af   :  { %v1234_v42 = vpop.eup %1233  ;;  %v1077_v55 = vmul.f32 %v1232_v54, %v1852_v13  ;;  %v896_v34 = vmul.f32 %v884_v7, %v1938_v53  ;;  %v903_v56 = vadd.f32 -0.18628806, %v891_v11  ;;  %v904_v57 = vadd.f32 -0.18628806, %v892_v58 }
 0x2b0   :  { %v1236_v47 = vpop.eup %1235  ;;  %v1078_v15 = vmul.f32 %v1234_v42, %v1856_v32  ;;  %v905_v62 = vadd.f32 -0.18628806, %v893_v25  ;;  %v906_v50 = vadd.f32 -0.18628806, %v894_v35  ;;  %v907_v9 = vadd.f32 -0.18628806, %v895_v17 }
 0x2b1   :  { %v1238_v41 = vpop.eup %1237  ;;  %v1079_v40 = vmul.f32 %v1236_v47, %v1859_v30  ;;  %v1089_v13 = vsub.f32 1.0, %v1077_v55  ;;  %v908_v43 = vadd.f32 -0.18628806, %v896_v34  ;;  %v915_v32 = vmul.f32 %v903_v56, %v1920_v16 }
 0x2b2   :  { %v1240_v0 = vpop.eup %1239  ;;  %v1080_v61 = vmul.f32 %v1238_v41, %v1863_v49  ;;  %v1090_v52 = vsub.f32 1.0, %v1078_v15  ;;  %v916_v44 = vmul.f32 %v904_v57, %v1924_v45  ;;  %v917_v7 = vmul.f32 %v905_v62, %v1928_v29 }
 0x2b3   :  { %v1242_v14 = vpop.eup %1241  ;;  %v1081_v19 = vmul.f32 %v1240_v0, %v1869_v63  ;;  %v1091_v37 = vsub.f32 1.0, %v1079_v40  ;;  %v1113_v3 = vsub.f32 0.0, %v1089_v13  ;;  %v918_v58 = vmul.f32 %v906_v50, %v1931_v27 }
 0x2b4   :  { %v1082_v30 = vmul.f32 %v1242_v14, %v1875_v26  ;;  %v1092_v48 = vsub.f32 1.0, %v1080_v61  ;;  %v1114_v46 = vsub.f32 0.0, %v1090_v52  ;;  %v919_v34 = vmul.f32 %v907_v9, %v1934_v23 }
 0x2b5   :  { %v1093_v54 = vsub.f32 1.0, %v1081_v19  ;;  %v1115_v11 = vsub.f32 0.0, %v1091_v37  ;;  %v1125_v49 = vsel %vm1101_vm0, %v1089_v13, %v1113_v3  ;;  %v920_v41 = vmul.f32 %v908_v43, %v1938_v53 }
 0x2b6   :  { %v1094_v25 = vsub.f32 1.0, %v1082_v30  ;;  %v1116_v42 = vsub.f32 0.0, %v1092_v48  ;;  %v1126_v63 = vsel %vm1102_vm1, %v1090_v52, %v1114_v46  ;;  %v1137_v55 = vadd.f32 1.0, %v1125_v49 }
 0x2b7   :  { %v1117_v35 = vsub.f32 0.0, %v1093_v54  ;;  %v1127_v26 = vsel %vm1103_vm2, %v1091_v37, %v1115_v11  ;;  %v1138_v17 = vadd.f32 1.0, %v1126_v63  ;;  %v927_v8 = vadd.f32 0.09678418, %v915_v32 }
 0x2b8   :  { %v1118_v47 = vsub.f32 0.0, %v1094_v25  ;;  %v1128_v22 = vsel %vm1104_vm3, %v1092_v48, %v1116_v42  ;;  %v1139_v15 = vadd.f32 1.0, %v1127_v26  ;;  %v1149_v56 = vmul.f32 %v1137_v55, %v1710_v21 }
 0x2b9   :  { %v1129_v57 = vsel %vm1105_vm4, %v1093_v54, %v1117_v35  ;;  %v1140_v60 = vadd.f32 1.0, %v1128_v22  ;;  %v1150_v62 = vmul.f32 %v1138_v17, %v1712_v4  ;;  %v928_v4 = vadd.f32 0.09678418, %v916_v44 }
 0x2ba   :  { %v1130_v20 = vsel %vm1106_vm5, %v1094_v25, %v1118_v47  ;;  %v1141_v40 = vadd.f32 1.0, %v1129_v57  ;;  %v1151_v13 = vmul.f32 %v1139_v15, %v1714_v2  ;;  %1161 = vst [vmem:[%s2122_s2 + $0x30] sm:$0xff] %v1149_v56  ;;  %v929_v50 = vadd.f32 0.09678418, %v917_v7 }
 0x2bb   :  { %v1142_v21 = vadd.f32 1.0, %v1130_v20  ;;  %v1152_v31 = vmul.f32 %v1140_v60, %v1716_v51  ;;  %1162 = vst [vmem:[%s2122_s2 + $0x38] sm:$0xff] %v1150_v62  ;;  %v930_v2 = vadd.f32 0.09678418, %v918_v58  ;;  %v931_v9 = vadd.f32 0.09678418, %v919_v34 }
 0x2bc   :  { %v1153_v24 = vmul.f32 %v1141_v40, %v1718_v59  ;;  %1163 = vst [vmem:[%s2122_s2 + $0x40] sm:$0xff] %v1151_v13  ;;  %v932_v0 = vadd.f32 0.09678418, %v920_v41  ;;  %v939_v51 = vmul.f32 %v927_v8, %v1920_v16  ;;  %v940_v52 = vmul.f32 %v928_v4, %v1924_v45 }
 0x2bd   :  { %v1154_v61 = vmul.f32 %v1142_v21, %v1720_v28  ;;  %1164 = vst [vmem:[%s2122_s2 + $0x48] sm:$0xff] %v1152_v31  ;;  %v941_v43 = vmul.f32 %v929_v50, %v1928_v29  ;;  %v942_v59 = vmul.f32 %v930_v2, %v1931_v27  ;;  %v943_v32 = vmul.f32 %v931_v9, %v1934_v23 }
 0x2be   :  { %1165 = vst [vmem:[%s2122_s2 + $0x50] sm:$0xff] %v1153_v24  ;;  %v944_v28 = vmul.f32 %v932_v0, %v1938_v53  ;;  %v1014_v14 = vsub.f32 0.0, %v1816_v18  ;;  %v951_v19 = vadd.f32 0.37409195, %v939_v51  ;;  %v952_v37 = vadd.f32 0.37409195, %v940_v52 }
 0x2bf   :  { %1166 = vst [vmem:[%s2122_s2 + $0x58] sm:$0xff] %v1154_v61  ;;  %v953_v3 = vadd.f32 0.37409195, %v941_v43  ;;  %v954_v44 = vadd.f32 0.37409195, %v942_v59  ;;  %v1015_v11 = vsub.f32 0.0, %v1819_v36  ;;  %v1023_v26 = vmul.f32 %v1011_v33, %v1807_v12 }
 0x2c0   :  { %v955_v30 = vadd.f32 0.37409195, %v943_v32  ;;  %v956_v48 = vadd.f32 0.37409195, %v944_v28  ;;  %v963_v46 = vmul.f32 %v951_v19, %v1920_v16  ;;  %v964_v7 = vmul.f32 %v952_v37, %v1924_v45 }
 0x2c1   :  { %v965_v54 = vmul.f32 %v953_v3, %v1928_v29  ;;  %v966_v49 = vmul.f32 %v954_v44, %v1931_v27  ;;  %v1016_v42 = vsub.f32 0.0, %v1822_v38  ;;  %v1024_v22 = vmul.f32 %v1012_v39, %v1810_v6 }
 0x2c2   :  { %v967_v58 = vmul.f32 %v955_v30, %v1934_v23  ;;  %v968_v25 = vmul.f32 %v956_v48, %v1938_v53  ;;  %v975_v63 = vadd.f32 1.0000237, %v963_v46  ;;  %v976_v55 = vadd.f32 1.0000237, %v964_v7  ;;  %v2219_v7 = vld [vmem:[#allocation10_spill] sm:$0xff] }
 0x2c3   :  { %v977_v35 = vadd.f32 1.0000237, %v965_v54  ;;  %v978_v17 = vadd.f32 1.0000237, %v966_v49  ;;  %v1025_v60 = vmul.f32 %v1013_v1, %v1813_v10  ;;  %v1026_v41 = vmul.f32 %v1014_v14, %v1816_v18 }
 0x2c4   :  { %v979_v34 = vadd.f32 1.0000237, %v967_v58  ;;  %v980_v47 = vadd.f32 1.0000237, %v968_v25  ;;  %v987_v15 = vmul.f32 %v975_v63, %v1920_v16  ;;  %v988_v56 = vmul.f32 %v976_v55, %v1924_v45  ;;  %v2221_v58 = vld [vmem:[#allocation12_spill] sm:$0xff] }
 0x2c5   :  { %v989_v57 = vmul.f32 %v977_v35, %v1928_v29  ;;  %v990_v62 = vmul.f32 %v978_v17, %v1931_v27  ;;  %v1027_v40 = vmul.f32 %v1015_v11, %v1819_v36  ;;  %v1028_v31 = vmul.f32 %v1016_v42, %v1822_v38  ;;  %v2220_v11 = vld [vmem:[#allocation11_spill] sm:$0xff] }
 0x2c6   :  { %v991_v12 = vmul.f32 %v979_v34, %v1934_v23  ;;  %v992_v33 = vmul.f32 %v980_v47, %v1938_v53  ;;  %v999_v20 = vadd.f32 -1.2655122, %v987_v15  ;;  %v1000_v6 = vadd.f32 -1.2655122, %v988_v56  ;;  %v2224_v56 = vld [vmem:[#allocation14_spill] sm:$0xff] }
 0x2c7   :  { %v1001_v39 = vadd.f32 -1.2655122, %v989_v57  ;;  %v1002_v13 = vadd.f32 -1.2655122, %v990_v62  ;;  %vm1096_vm7 = vcmp.ge.f32.partialorder %v2219_v7, 0.0  ;;  %vm1097_vm8 = vcmp.ge.f32.partialorder %v2220_v11, 0.0 }
 0x2c8   :  { %v1003_v8 = vadd.f32 -1.2655122, %v991_v12  ;;  %v1004_v21 = vadd.f32 -1.2655122, %v992_v33  ;;  %v1035_v4 = vadd.f32 %v1023_v26, %v999_v20  ;;  %v1036_v10 = vadd.f32 %v1024_v22, %v1000_v6  ;;  %v2223_v22 = vld [vmem:[#allocation4_spill] sm:$0xff]  ;;  %v2225_v62 = vld [vmem:[#allocation5_spill] sm:$0xff] }
 0x2c9   :  { %v1037_v1 = vadd.f32 %v1025_v60, %v1001_v39  ;;  %v1038_v50 = vadd.f32 %v1026_v41, %v1002_v13  ;;  %vm1098_vm9 = vcmp.ge.f32.partialorder %v2221_v58, 0.0  ;;  %vm1100_vm11 = vcmp.ge.f32.partialorder %v2224_v56, 0.0  ;;  %v2226_v20 = vld [vmem:[#allocation6_spill] sm:$0xff] }
 0x2ca   :  { %v1039_v24 = vadd.f32 %v1027_v40, %v1003_v8  ;;  %v1040_v2 = vadd.f32 %v1028_v31, %v1004_v21  ;;  %v1047_v9 = vmul.f32 1.442695, %v1035_v4  ;;  %v1049_v0 = vmul.f32 1.442695, %v1036_v10  ;;  %v2227_v40 = vld [vmem:[#allocation7_spill] sm:$0xff]  ;;  %v2228_v8 = vld [vmem:[#allocation8_spill] sm:$0xff] }
 0x2cb   :  { %v1051_v61 = vmul.f32 1.442695, %v1037_v1  ;;  %v1053_v18 = vmul.f32 1.442695, %v1038_v50  ;;  %v2229_v31 = vld [vmem:[#allocation9_spill] sm:$0xff] }
 0x2cc   :  { %1243 = vpow2.f32 %v1047_v9  ;;  %v1055_v51 = vmul.f32 1.442695, %v1039_v24  ;;  %v1057_v52 = vmul.f32 1.442695, %v1040_v2 }
 0x2cd   :  { %1245 = vpow2.f32 %v1049_v0 }
 0x2ce   :  { %1247 = vpow2.f32 %v1051_v61 }
 0x2cf   :  { %1249 = vpow2.f32 %v1053_v18 }
 0x2d0   :  { %1251 = vpow2.f32 %v1055_v51 }
 0x2d1   :  { %1253 = vpow2.f32 %v1057_v52 }
 0x2d9   :  { %v1244_v36 = vpop.eup %1243 }
 0x2da   :  { %v1246_v38 = vpop.eup %1245  ;;  %v1071_v43 = vmul.f32 %v1244_v36, %v1920_v16 }
 0x2db   :  { %v1248_v59 = vpop.eup %1247  ;;  %v1072_v32 = vmul.f32 %v1246_v38, %v1924_v45 }
 0x2dc   :  { %v1250_v28 = vpop.eup %1249  ;;  %v1073_v14 = vmul.f32 %v1248_v59, %v1928_v29  ;;  %v1083_v19 = vsub.f32 1.0, %v1071_v43 }
 0x2dd   :  { %v1252_v37 = vpop.eup %1251  ;;  %v1074_v3 = vmul.f32 %v1250_v28, %v1931_v27  ;;  %v1084_v44 = vsub.f32 1.0, %v1072_v32 }
 0x2de   :  { %v1254_v30 = vpop.eup %1253  ;;  %v1075_v48 = vmul.f32 %v1252_v37, %v1934_v23  ;;  %v1085_v46 = vsub.f32 1.0, %v1073_v14  ;;  %v1107_v16 = vsub.f32 0.0, %v1083_v19  ;;  %v2222_v23 = vld [vmem:[#allocation13_spill] sm:$0xff] }
 0x2df   :  { %v1076_v54 = vmul.f32 %v1254_v30, %v1938_v53  ;;  %v1086_v45 = vsub.f32 1.0, %v1074_v3  ;;  %v1108_v29 = vsub.f32 0.0, %v1084_v44  ;;  %vm1099_vm10 = vcmp.ge.f32.partialorder %v2222_v23, 0.0 }
 0x2e0   :  { %v1087_v49 = vsub.f32 1.0, %v1075_v48  ;;  %v1109_v27 = vsub.f32 0.0, %v1085_v46  ;;  %v1119_v25 = vsel %vm1095_vm6, %v1083_v19, %v1107_v16 }
 0x2e1   :  { %v1088_v42 = vsub.f32 1.0, %v1076_v54  ;;  %v1110_v5 = vsub.f32 0.0, %v1086_v45  ;;  %v1120_v63 = vsel %vm1096_vm7, %v1084_v44, %v1108_v29  ;;  %v1131_v55 = vadd.f32 1.0, %v1119_v25 }
 0x2e2   :  { %v1111_v35 = vsub.f32 0.0, %v1087_v49  ;;  %v1121_v26 = vsel %vm1097_vm8, %v1085_v46, %v1109_v27  ;;  %v1132_v17 = vadd.f32 1.0, %v1120_v63 }
 0x2e3   :  { %v1112_v34 = vsub.f32 0.0, %v1088_v42  ;;  %v1122_v53 = vsel %vm1098_vm9, %v1086_v45, %v1110_v5  ;;  %v1133_v47 = vadd.f32 1.0, %v1121_v26  ;;  %v1143_v15 = vmul.f32 %v1131_v55, %v2223_v22 }
 0x2e4   :  { %v1123_v57 = vsel %vm1099_vm10, %v1087_v49, %v1111_v35  ;;  %v1134_v60 = vadd.f32 1.0, %v1122_v53  ;;  %v1144_v12 = vmul.f32 %v1132_v17, %v2225_v62 }
 0x2e5   :  { %v1124_v33 = vsel %vm1100_vm11, %v1088_v42, %v1112_v34  ;;  %v1135_v41 = vadd.f32 1.0, %v1123_v57  ;;  %v1145_v6 = vmul.f32 %v1133_v47, %v2226_v20  ;;  %1155 = vst [vmem:[%s2122_s2] sm:$0xff] %v1143_v15 }
 0x2e6   :  { %v1136_v39 = vadd.f32 1.0, %v1124_v33  ;;  %v1146_v13 = vmul.f32 %v1134_v60, %v2227_v40  ;;  %1156 = vst [vmem:[%s2122_s2 + $0x8] sm:$0xff] %v1144_v12 }
 0x2e7   :  { %v1147_v21 = vmul.f32 %v1135_v41, %v2228_v8  ;;  %1157 = vst [vmem:[%s2122_s2 + $0x10] sm:$0xff] %v1145_v6 }
 0x2e8   :  { %v1148_v4 = vmul.f32 %v1136_v39, %v2229_v31  ;;  %1158 = vst [vmem:[%s2122_s2 + $0x18] sm:$0xff] %v1146_v13 }
 0x2e9   :  { %1159 = vst [vmem:[%s2122_s2 + $0x20] sm:$0xff] %v1147_v21 }
 0x2ea   :  { %1160 = vst [vmem:[%s2122_s2 + $0x28] sm:$0xff] %v1148_v4 }

</bundles_post_ra>
